<compile_context>
chip_gen: v5e
topology: v5e:2x2
jax: 0.10.0
libtpu: 0.0.40
codegen_flags: <defaults>
</compile_context>

<pallas_src>
import math
import numpy as np
import jax
import jax.numpy as jnp
from jax import lax
from jax.experimental import pallas as pl
from jax.experimental.pallas import tpu as pltpu

# Safe on every generation (v7x scoped default is 32 MiB / 64 MiB physical).
_VMEM_LIMIT = 32 * 1024 * 1024

# Big matmuls / the dominant DMA stream in bf16; accumulation stays f32.
_MXU_DTYPE = jnp.bfloat16


def _mm(a, b):
    """bf16 MXU matmul with f32 accumulation."""
    return jnp.dot(a.astype(_MXU_DTYPE), b.astype(_MXU_DTYPE),
                   preferred_element_type=jnp.float32)


def _round_up(x, m):
    return ((x + m - 1) // m) * m


def _choose_tile(m, cap):
    """Lane tile: multiple of 128, <= cap, aiming for >=4 grid steps on big M
    (keeps both v7x TensorCores busy and the DMA pipeline double-buffered)."""
    t = _round_up(max(1, m // 4), 128)
    return int(max(128, min(cap, t)))


# --------------------------------------------------------------------------
# Pallas kernels
# --------------------------------------------------------------------------
def unigram_embed_kernel(p_ref, w_ref, b_ref, o_ref):
    """Grouped (groups = dim//2) WSxWS stride-WS conv as per-channel contraction.

    p_ref: (R, C, TM) patches   (R = 2*WS*WS on the LEADING dim -> VPU adds)
    w_ref: (R, C, 1)  weights   b_ref: (C, 1)
    o_ref: (C, TM)    lane-dense output (positions on lanes)

    Explicit unrolled accumulation over R keeps the live set at one (C, TM)
    tile instead of materializing the (R, C, TM) product (no spill traffic).
    """
    R = p_ref.shape[0]
    acc = p_ref[0] * w_ref[0]
    for r in range(1, R):
        acc = acc + p_ref[r] * w_ref[r]
    o_ref[...] = acc + b_ref[...]


def _make_attn_kernel(N, C, TW):
    """Fused bidirectional ngram window-attention + token-mean + proj + merge."""
    WL = 2 * TW                      # lanes per window token: [fwd TW | bwd TW]

    def kernel(x_ref, wqkv_ref, bqkv_ref, hb_ref, scale_ref, bias_ref,
               wproj_ref, bproj_ref, wmf_ref, wmb_ref, bm_ref, out_ref):
        # x_ref   : (C, N*WL) bf16  channels on sublanes, (token, stream, pos) on lanes
        # wqkv    : (3C, C)   bqkv : (3C, 1)
        # hb      : (C, C)    1 where same head (head-sum + head-broadcast matrix)
        # scale   : (C, 1)    clamped+exp'd logit scale replicated per channel
        # bias    : (N, N, C, 1) relative-position bias [query, key, channel]
        # wproj   : (C, C)    bproj: (C, 1)
        # wmf/wmb : (D, C)    merge weight split per stream   bm: (D, 1)
        # out_ref : (D, TW)   lane-dense output
        x = x_ref[...]
        hb = hb_ref[...]

        # ---- QKV: one wide MXU matmul over all tokens & both streams ----
        qkv = _mm(wqkv_ref[...], x) + bqkv_ref[...]            # (3C, N*WL) f32
        q = qkv[0 * C:1 * C, :]
        k = qkv[1 * C:2 * C, :]
        v = qkv[2 * C:3 * C, :]

        # ---- cosine attention: per-head L2 normalize; head reduce/broadcast
        #      via the hb matmul (full sublane occupancy, no sub-hd reshapes),
        #      rsqrt on the EUP.  Logit scale folded into q per channel. ----
        qn = q * lax.rsqrt(jnp.maximum(
            jnp.dot(hb, q * q, preferred_element_type=jnp.float32), 1e-24))
        kn = k * lax.rsqrt(jnp.maximum(
            jnp.dot(hb, k * k, preferred_element_type=jnp.float32), 1e-24))
        qn = qn * scale_ref[...]

        # ---- attention, fully unrolled over query token i / key token j.
        #      Live set stays O(C*WL); no (N, N, nh, hd, W) temporaries. ----
        om = jnp.zeros((C, WL), jnp.float32)
        for i in range(N):
            qi = qn[:, i * WL:(i + 1) * WL]
            s = []
            for j in range(N):
                kj = kn[:, j * WL:(j + 1) * WL]
                sij = jnp.dot(hb, qi * kj, preferred_element_type=jnp.float32)
                s.append(sij + bias_ref[i, j])                 # (C, WL)
            m = s[0]
            for j in range(1, N):
                m = jnp.maximum(m, s[j])
            p = [jnp.exp(sij - m) for sij in s]
            den = p[0]
            for j in range(1, N):
                den = den + p[j]
            # approx reciprocal -> EUP slot; ~1e-3 rel. tolerance vs exact softmax
            inv = pl.reciprocal(den, approx=True)
            oi = p[0] * v[:, 0:WL]
            for j in range(1, N):
                oi = oi + p[j] * v[:, j * WL:(j + 1) * WL]
            om = om + oi * inv

        # AvgPool2d(ngram) == mean over the N window tokens; commutes with proj.
        om = om * (1.0 / N)
        ctx = _mm(wproj_ref[...], om) + bproj_ref[...]          # (C, WL)

        # 1x1 merge with the weight split per stream (no lane->sublane concat).
        out_ref[...] = (_mm(wmf_ref[...], ctx[:, :TW]) +
                        _mm(wmb_ref[...], ctx[:, TW:]) +
                        bm_ref[...])                            # (D, TW)

    return kernel


# --------------------------------------------------------------------------
# JAX glue (padding, window extraction, parameter prep)
# --------------------------------------------------------------------------
def get_relative_position_index(win_h, win_w):
    coords = np.stack(np.meshgrid(np.arange(win_h), np.arange(win_w),
                                  indexing='ij'))
    coords_flatten = coords.reshape(2, -1)
    rel = coords_flatten[:, :, None] - coords_flatten[:, None, :]
    rel = rel.transpose(1, 2, 0).copy()
    rel[:, :, 0] += win_h - 1
    rel[:, :, 1] += win_w - 1
    rel[:, :, 0] *= 2 * win_w - 1
    return rel.sum(-1)                                   # (N, N) int


def seq_refl_win_pad(x, ngram, back=False):
    """x: [B, C, H, W]; replicates the torch seq_refl_win_pad semantics."""
    if ngram == 1:
        return x
    ng = ngram
    if not back:
        xp = jnp.pad(x, ((0, 0), (0, 0), (0, ng - 1), (0, ng - 1)))
        xp = xp.at[:, :, -(ng - 1):, :].set(xp[:, :, -2 * ng + 1:-ng, :])
        xp = xp.at[:, :, :, -(ng - 1):].set(xp[:, :, :, -2 * ng + 1:-ng])
    else:
        xp = jnp.pad(x, ((0, 0), (0, 0), (ng - 1, 0), (ng - 1, 0)))
        xp = xp.at[:, :, :ng - 1, :].set(xp[:, :, ng:2 * ng - 1, :])
        xp = xp.at[:, :, :, :ng - 1].set(xp[:, :, :, ng:2 * ng - 1])
    return xp


def build_windows(padded, ngram):
    """padded: [B, C, H+ng-1, W+ng-1] -> windows [N, C, B*H*W].

    Token ordering replicates torch unfold + rearrange: token t = kw*ng + kh
    holds padded[b, c, h+kh, w+kw]; position m = b*H*W + h*W + w.
    """
    B, C, PH, PW = padded.shape
    H = PH - ngram + 1
    W = PW - ngram + 1
    toks = []
    for kw in range(ngram):
        for kh in range(ngram):
            toks.append(padded[:, :, kh:kh + H, kw:kw + W])    # (B, C, H, W)
    t = jnp.stack(toks, axis=0)                                # (N, B, C, H, W)
    t = jnp.transpose(t, (0, 2, 1, 3, 4))                      # (N, C, B, H, W)
    return t.reshape(ngram * ngram, C, B * H * W)              # (N, C, M)


def unigram_embed(x, weight, bias, window_size):
    """x: [B, ph, pw, D] -> [B, C, H, W] via the lane-dense Pallas kernel."""
    B, ph, pw, D = x.shape
    C = D // 2
    WS = window_size
    H, W = ph // WS, pw // WS
    M = B * H * W
    R = 2 * WS * WS

    # patches[r=(ic,kh,kw), c, m=(b,h,w)] = x[b, h*WS+kh, w*WS+kw, 2c+ic]
    xr = x.reshape(B, H, WS, W, WS, C, 2)
    patches = jnp.transpose(xr, (6, 2, 4, 5, 0, 1, 3)).reshape(R, C, M)
    w_r = jnp.transpose(weight, (1, 2, 3, 0)).reshape(R, C, 1)
    b_r = bias.reshape(C, 1)

    TM = _choose_tile(M, cap=1024)
    Mp = _round_up(M, TM)
    patches = jnp.pad(patches, ((0, 0), (0, 0), (0, Mp - M)))

    uni = pl.pallas_call(
        unigram_embed_kernel,
        out_shape=jax.ShapeDtypeStruct((C, Mp), jnp.float32),
        grid=(Mp // TM,),
        in_specs=[
            pl.BlockSpec((R, C, TM), lambda i: (0, 0, i)),
            pl.BlockSpec((R, C, 1), lambda i: (0, 0, 0)),
            pl.BlockSpec((C, 1), lambda i: (0, 0)),
        ],
        out_specs=pl.BlockSpec((C, TM), lambda i: (0, i)),
        compiler_params=pltpu.CompilerParams(
            dimension_semantics=("parallel",),
            vmem_limit_bytes=_VMEM_LIMIT),
    )(patches, w_r, b_r)
    uni = uni[:, :M]
    return uni.reshape(C, B, H, W).transpose(1, 0, 2, 3)       # [B, C, H, W]


def init_params(key, dim, window_size, ngram, ngram_num_heads):
    C = dim // 2
    WS = window_size
    nh = ngram_num_heads
    ks = jax.random.split(key, 8)
    p = {}
    p['uni_w'] = 0.1 * jax.random.normal(ks[0], (C, 2, WS, WS), jnp.float32)
    p['uni_b'] = 0.1 * jax.random.normal(ks[1], (C,), jnp.float32)
    p['qkv_w'] = 0.1 * jax.random.normal(ks[2], (3 * C, C), jnp.float32)   # torch [out,in]
    p['qkv_b'] = 0.1 * jax.random.normal(ks[3], (3 * C,), jnp.float32)
    p['proj_w'] = 0.1 * jax.random.normal(ks[4], (C, C), jnp.float32)
    p['proj_b'] = 0.1 * jax.random.normal(ks[5], (C,), jnp.float32)
    # TODO(synk): trunc_normal_(std=0.02) approximated with plain normal*0.02
    p['rpb_table'] = 0.02 * jax.random.normal(
        ks[6], ((2 * ngram - 1) * (2 * ngram - 1), nh), jnp.float32)
    p['logit_scale'] = jnp.log(10.0 * jnp.ones((nh, 1, 1), jnp.float32))
    p['merge_w'] = 0.1 * jax.random.normal(ks[7], (dim, dim), jnp.float32)  # torch [out,in]
    p['merge_b'] = jnp.zeros((dim,), jnp.float32)
    return p


def swa_forward(x, params, window_size, ngram, ngram_num_heads):
    B, ph, pw, D = x.shape
    C = D // 2
    N = ngram * ngram
    nh = ngram_num_heads
    hd = C // nh
    H, W = ph // window_size, pw // window_size
    M = B * H * W

    # ---- unigram embed (grouped strided conv, Pallas) ----
    unigram = unigram_embed(x, params['uni_w'], params['uni_b'], window_size)

    # ---- seq_refl padding + window token extraction (tiny XLA glue) ----
    upf = seq_refl_win_pad(unigram, ngram, back=False)
    upb = seq_refl_win_pad(unigram, ngram, back=True)
    xwf = build_windows(upf, ngram)                            # (N, C, M)
    xwb = build_windows(upb, ngram)

    # ---- HBM layout for the attention kernel ----
    # pad positions to a 128-aligned tile, interleave (token, stream) per tile
    # so every block arrives as (C, N*2*TW) lane-dense with no in-kernel
    # relayout, and cast the dominant stream to bf16 (half the DMA bytes).
    TW = _choose_tile(M, cap=512)     # re-budget cap for very large C on v7x
    Mp = _round_up(M, TW)
    G = Mp // TW
    WL = 2 * TW

    def _prep(a):
        a = jnp.pad(a, ((0, 0), (0, 0), (0, Mp - M)))
        return a.reshape(N, C, G, TW)
    xs = jnp.stack([_prep(xwf), _prep(xwb)], axis=3)           # (N, C, G, 2, TW)
    xs = jnp.transpose(xs, (1, 2, 0, 3, 4))                    # (C, G, N, 2, TW)
    xs = xs.reshape(C, G * N * WL).astype(_MXU_DTYPE)          # bf16 HBM stream

    # ---- small parameters ----
    wqkv = params['qkv_w']                                     # (3C, C)
    bqkv = params['qkv_b'].reshape(3 * C, 1)
    wproj = params['proj_w']                                   # (C, C)
    bproj = params['proj_b'].reshape(C, 1)
    # head-sum / head-broadcast matrix: hb[a, b] = 1 iff a//hd == b//hd
    heads = jnp.arange(C) // hd
    hb = (heads[:, None] == heads[None, :]).astype(jnp.float32)
    # clamped logit scale, folded into q per channel
    scale = jnp.exp(jnp.minimum(params['logit_scale'].reshape(nh),
                                math.log(1.0 / 0.01)))
    scale_c = jnp.repeat(scale, hd).reshape(C, 1)
    # relative-position bias, replicated across the hd channels of each head
    rel_idx = get_relative_position_index(ngram, ngram).reshape(-1)
    rb = params['rpb_table'][rel_idx].reshape(N, N, nh)        # [query, key, head]
    rb_c = jnp.repeat(rb, hd, axis=2).reshape(N, N, C, 1).astype(jnp.float32)
    wmerge = params['merge_w']                                 # (D, D)
    wm_f = wmerge[:, :C]
    wm_b = wmerge[:, C:]
    bm = params['merge_b'].reshape(D, 1)

    kernel = _make_attn_kernel(N, C, TW)
    out = pl.pallas_call(
        kernel,
        out_shape=jax.ShapeDtypeStruct((D, Mp), jnp.float32),
        grid=(G,),
        in_specs=[
            pl.BlockSpec((C, N * WL), lambda i: (0, i)),
            pl.BlockSpec((3 * C, C), lambda i: (0, 0)),
            pl.BlockSpec((3 * C, 1), lambda i: (0, 0)),
            pl.BlockSpec((C, C), lambda i: (0, 0)),
            pl.BlockSpec((C, 1), lambda i: (0, 0)),
            pl.BlockSpec((N, N, C, 1), lambda i: (0, 0, 0, 0)),
            pl.BlockSpec((C, C), lambda i: (0, 0)),
            pl.BlockSpec((C, 1), lambda i: (0, 0)),
            pl.BlockSpec((D, C), lambda i: (0, 0)),
            pl.BlockSpec((D, C), lambda i: (0, 0)),
            pl.BlockSpec((D, 1), lambda i: (0, 0)),
        ],
        out_specs=pl.BlockSpec((D, TW), lambda i: (0, i)),
        compiler_params=pltpu.CompilerParams(
            dimension_semantics=("parallel",),
            vmem_limit_bytes=_VMEM_LIMIT),
    )(xs, wqkv, bqkv, hb, scale_c, rb_c, wproj, bproj, wm_f, wm_b, bm)

    out = out[:, :M]                                           # drop lane padding
    out = out.reshape(D, B, H, W).transpose(1, 2, 3, 0)        # (B, H, W, D)
    return out[:, :, :, None, None, :]                         # (B, H, W, 1, 1, D)


if __name__ == "__main__":
    B, ph, pw = 2, 16, 16
    dim, window_size, ngram, ngram_num_heads = 16, 4, 2, 2

    key = jax.random.PRNGKey(0)
    kx, kp = jax.random.split(key)
    x = jax.random.normal(kx, (B, ph, pw, dim), jnp.float32)
    params = init_params(kp, dim, window_size, ngram, ngram_num_heads)

    fwd = jax.jit(lambda xx: swa_forward(xx, params, window_size, ngram,
                                         ngram_num_heads))
    out = fwd(x)
    jax.block_until_ready(out)
    assert out.shape == (B, ph // window_size, pw // window_size, 1, 1, dim), out.shape
    assert bool(jnp.all(jnp.isfinite(out)))
    print("KERNEL_OK")
</pallas_src>

<mosaic_0001>
module attributes {stable_mosaic.version = 11 : i64} {
  func.func @unigram_embed_kernel(%arg0: i32, %arg1: memref<32x8x128xf32, #tpu.memory_space<vmem>>, %arg2: memref<32x8x1xf32, #tpu.memory_space<vmem>>, %arg3: memref<8x1xf32, #tpu.memory_space<vmem>>, %arg4: memref<8x128xf32, #tpu.memory_space<vmem>>) attributes {dimension_semantics = [#tpu.dimension_semantics<parallel>], iteration_bounds = array<i64: 1>, scalar_prefetch = 0 : i64, scratch_operands = 0 : i64, tpu.core_type = #tpu.core_type<tc>, window_params = [{transform_indices = @transform_0, window_bounds = array<i64: 32, 8, 128>}, {pipeline_mode = #tpu.pipeline_mode<synchronous>, transform_indices = @transform_1, window_bounds = array<i64: 32, 8, 1>}, {pipeline_mode = #tpu.pipeline_mode<synchronous>, transform_indices = @transform_2, window_bounds = array<i64: 8, 1>}, {transform_indices = @transform_3, window_bounds = array<i64: 8, 128>}]} {
    %c0 = arith.constant 0 : index
    %c0_0 = arith.constant 0 : index
    %c0_1 = arith.constant 0 : index
    %0 = vector.load %arg1[%c0, %c0_0, %c0_1] : memref<32x8x128xf32, #tpu.memory_space<vmem>>, vector<1x8x128xf32>
    %1 = vector.shape_cast %0 : vector<1x8x128xf32> to vector<8x128xf32>
    %c0_2 = arith.constant 0 : index
    %c0_3 = arith.constant 0 : index
    %c0_4 = arith.constant 0 : index
    %2 = vector.load %arg2[%c0_2, %c0_3, %c0_4] : memref<32x8x1xf32, #tpu.memory_space<vmem>>, vector<1x8x1xf32>
    %3 = vector.shape_cast %2 : vector<1x8x1xf32> to vector<8x1xf32>
    %4 = vector.broadcast %3 : vector<8x1xf32> to vector<8x128xf32>
    %5 = arith.mulf %1, %4 : vector<8x128xf32>
    %c1 = arith.constant 1 : index
    %c0_5 = arith.constant 0 : index
    %c0_6 = arith.constant 0 : index
    %6 = vector.load %arg1[%c1, %c0_5, %c0_6] : memref<32x8x128xf32, #tpu.memory_space<vmem>>, vector<1x8x128xf32>
    %7 = vector.shape_cast %6 : vector<1x8x128xf32> to vector<8x128xf32>
    %c1_7 = arith.constant 1 : index
    %c0_8 = arith.constant 0 : index
    %c0_9 = arith.constant 0 : index
    %8 = vector.load %arg2[%c1_7, %c0_8, %c0_9] : memref<32x8x1xf32, #tpu.memory_space<vmem>>, vector<1x8x1xf32>
    %9 = vector.shape_cast %8 : vector<1x8x1xf32> to vector<8x1xf32>
    %10 = vector.broadcast %9 : vector<8x1xf32> to vector<8x128xf32>
    %11 = arith.mulf %7, %10 : vector<8x128xf32>
    %12 = arith.addf %5, %11 : vector<8x128xf32>
    %c2 = arith.constant 2 : index
    %c0_10 = arith.constant 0 : index
    %c0_11 = arith.constant 0 : index
    %13 = vector.load %arg1[%c2, %c0_10, %c0_11] : memref<32x8x128xf32, #tpu.memory_space<vmem>>, vector<1x8x128xf32>
    %14 = vector.shape_cast %13 : vector<1x8x128xf32> to vector<8x128xf32>
    %c2_12 = arith.constant 2 : index
    %c0_13 = arith.constant 0 : index
    %c0_14 = arith.constant 0 : index
    %15 = vector.load %arg2[%c2_12, %c0_13, %c0_14] : memref<32x8x1xf32, #tpu.memory_space<vmem>>, vector<1x8x1xf32>
    %16 = vector.shape_cast %15 : vector<1x8x1xf32> to vector<8x1xf32>
    %17 = vector.broadcast %16 : vector<8x1xf32> to vector<8x128xf32>
    %18 = arith.mulf %14, %17 : vector<8x128xf32>
    %19 = arith.addf %12, %18 : vector<8x128xf32>
    %c3 = arith.constant 3 : index
    %c0_15 = arith.constant 0 : index
    %c0_16 = arith.constant 0 : index
    %20 = vector.load %arg1[%c3, %c0_15, %c0_16] : memref<32x8x128xf32, #tpu.memory_space<vmem>>, vector<1x8x128xf32>
    %21 = vector.shape_cast %20 : vector<1x8x128xf32> to vector<8x128xf32>
    %c3_17 = arith.constant 3 : index
    %c0_18 = arith.constant 0 : index
    %c0_19 = arith.constant 0 : index
    %22 = vector.load %arg2[%c3_17, %c0_18, %c0_19] : memref<32x8x1xf32, #tpu.memory_space<vmem>>, vector<1x8x1xf32>
    %23 = vector.shape_cast %22 : vector<1x8x1xf32> to vector<8x1xf32>
    %24 = vector.broadcast %23 : vector<8x1xf32> to vector<8x128xf32>
    %25 = arith.mulf %21, %24 : vector<8x128xf32>
    %26 = arith.addf %19, %25 : vector<8x128xf32>
    %c4 = arith.constant 4 : index
    %c0_20 = arith.constant 0 : index
    %c0_21 = arith.constant 0 : index
    %27 = vector.load %arg1[%c4, %c0_20, %c0_21] : memref<32x8x128xf32, #tpu.memory_space<vmem>>, vector<1x8x128xf32>
    %28 = vector.shape_cast %27 : vector<1x8x128xf32> to vector<8x128xf32>
    %c4_22 = arith.constant 4 : index
    %c0_23 = arith.constant 0 : index
    %c0_24 = arith.constant 0 : index
    %29 = vector.load %arg2[%c4_22, %c0_23, %c0_24] : memref<32x8x1xf32, #tpu.memory_space<vmem>>, vector<1x8x1xf32>
    %30 = vector.shape_cast %29 : vector<1x8x1xf32> to vector<8x1xf32>
    %31 = vector.broadcast %30 : vector<8x1xf32> to vector<8x128xf32>
    %32 = arith.mulf %28, %31 : vector<8x128xf32>
    %33 = arith.addf %26, %32 : vector<8x128xf32>
    %c5 = arith.constant 5 : index
    %c0_25 = arith.constant 0 : index
    %c0_26 = arith.constant 0 : index
    %34 = vector.load %arg1[%c5, %c0_25, %c0_26] : memref<32x8x128xf32, #tpu.memory_space<vmem>>, vector<1x8x128xf32>
    %35 = vector.shape_cast %34 : vector<1x8x128xf32> to vector<8x128xf32>
    %c5_27 = arith.constant 5 : index
    %c0_28 = arith.constant 0 : index
    %c0_29 = arith.constant 0 : index
    %36 = vector.load %arg2[%c5_27, %c0_28, %c0_29] : memref<32x8x1xf32, #tpu.memory_space<vmem>>, vector<1x8x1xf32>
    %37 = vector.shape_cast %36 : vector<1x8x1xf32> to vector<8x1xf32>
    %38 = vector.broadcast %37 : vector<8x1xf32> to vector<8x128xf32>
    %39 = arith.mulf %35, %38 : vector<8x128xf32>
    %40 = arith.addf %33, %39 : vector<8x128xf32>
    %c6 = arith.constant 6 : index
    %c0_30 = arith.constant 0 : index
    %c0_31 = arith.constant 0 : index
    %41 = vector.load %arg1[%c6, %c0_30, %c0_31] : memref<32x8x128xf32, #tpu.memory_space<vmem>>, vector<1x8x128xf32>
    %42 = vector.shape_cast %41 : vector<1x8x128xf32> to vector<8x128xf32>
    %c6_32 = arith.constant 6 : index
    %c0_33 = arith.constant 0 : index
    %c0_34 = arith.constant 0 : index
    %43 = vector.load %arg2[%c6_32, %c0_33, %c0_34] : memref<32x8x1xf32, #tpu.memory_space<vmem>>, vector<1x8x1xf32>
    %44 = vector.shape_cast %43 : vector<1x8x1xf32> to vector<8x1xf32>
    %45 = vector.broadcast %44 : vector<8x1xf32> to vector<8x128xf32>
    %46 = arith.mulf %42, %45 : vector<8x128xf32>
    %47 = arith.addf %40, %46 : vector<8x128xf32>
    %c7 = arith.constant 7 : index
    %c0_35 = arith.constant 0 : index
    %c0_36 = arith.constant 0 : index
    %48 = vector.load %arg1[%c7, %c0_35, %c0_36] : memref<32x8x128xf32, #tpu.memory_space<vmem>>, vector<1x8x128xf32>
    %49 = vector.shape_cast %48 : vector<1x8x128xf32> to vector<8x128xf32>
    %c7_37 = arith.constant 7 : index
    %c0_38 = arith.constant 0 : index
    %c0_39 = arith.constant 0 : index
    %50 = vector.load %arg2[%c7_37, %c0_38, %c0_39] : memref<32x8x1xf32, #tpu.memory_space<vmem>>, vector<1x8x1xf32>
    %51 = vector.shape_cast %50 : vector<1x8x1xf32> to vector<8x1xf32>
    %52 = vector.broadcast %51 : vector<8x1xf32> to vector<8x128xf32>
    %53 = arith.mulf %49, %52 : vector<8x128xf32>
    %54 = arith.addf %47, %53 : vector<8x128xf32>
    %c8 = arith.constant 8 : index
    %c0_40 = arith.constant 0 : index
    %c0_41 = arith.constant 0 : index
    %55 = vector.load %arg1[%c8, %c0_40, %c0_41] : memref<32x8x128xf32, #tpu.memory_space<vmem>>, vector<1x8x128xf32>
    %56 = vector.shape_cast %55 : vector<1x8x128xf32> to vector<8x128xf32>
    %c8_42 = arith.constant 8 : index
    %c0_43 = arith.constant 0 : index
    %c0_44 = arith.constant 0 : index
    %57 = vector.load %arg2[%c8_42, %c0_43, %c0_44] : memref<32x8x1xf32, #tpu.memory_space<vmem>>, vector<1x8x1xf32>
    %58 = vector.shape_cast %57 : vector<1x8x1xf32> to vector<8x1xf32>
    %59 = vector.broadcast %58 : vector<8x1xf32> to vector<8x128xf32>
    %60 = arith.mulf %56, %59 : vector<8x128xf32>
    %61 = arith.addf %54, %60 : vector<8x128xf32>
    %c9 = arith.constant 9 : index
    %c0_45 = arith.constant 0 : index
    %c0_46 = arith.constant 0 : index
    %62 = vector.load %arg1[%c9, %c0_45, %c0_46] : memref<32x8x128xf32, #tpu.memory_space<vmem>>, vector<1x8x128xf32>
    %63 = vector.shape_cast %62 : vector<1x8x128xf32> to vector<8x128xf32>
    %c9_47 = arith.constant 9 : index
    %c0_48 = arith.constant 0 : index
    %c0_49 = arith.constant 0 : index
    %64 = vector.load %arg2[%c9_47, %c0_48, %c0_49] : memref<32x8x1xf32, #tpu.memory_space<vmem>>, vector<1x8x1xf32>
    %65 = vector.shape_cast %64 : vector<1x8x1xf32> to vector<8x1xf32>
    %66 = vector.broadcast %65 : vector<8x1xf32> to vector<8x128xf32>
    %67 = arith.mulf %63, %66 : vector<8x128xf32>
    %68 = arith.addf %61, %67 : vector<8x128xf32>
    %c10 = arith.constant 10 : index
    %c0_50 = arith.constant 0 : index
    %c0_51 = arith.constant 0 : index
    %69 = vector.load %arg1[%c10, %c0_50, %c0_51] : memref<32x8x128xf32, #tpu.memory_space<vmem>>, vector<1x8x128xf32>
    %70 = vector.shape_cast %69 : vector<1x8x128xf32> to vector<8x128xf32>
    %c10_52 = arith.constant 10 : index
    %c0_53 = arith.constant 0 : index
    %c0_54 = arith.constant 0 : index
    %71 = vector.load %arg2[%c10_52, %c0_53, %c0_54] : memref<32x8x1xf32, #tpu.memory_space<vmem>>, vector<1x8x1xf32>
    %72 = vector.shape_cast %71 : vector<1x8x1xf32> to vector<8x1xf32>
    %73 = vector.broadcast %72 : vector<8x1xf32> to vector<8x128xf32>
    %74 = arith.mulf %70, %73 : vector<8x128xf32>
    %75 = arith.addf %68, %74 : vector<8x128xf32>
    %c11 = arith.constant 11 : index
    %c0_55 = arith.constant 0 : index
    %c0_56 = arith.constant 0 : index
    %76 = vector.load %arg1[%c11, %c0_55, %c0_56] : memref<32x8x128xf32, #tpu.memory_space<vmem>>, vector<1x8x128xf32>
    %77 = vector.shape_cast %76 : vector<1x8x128xf32> to vector<8x128xf32>
    %c11_57 = arith.constant 11 : index
    %c0_58 = arith.constant 0 : index
    %c0_59 = arith.constant 0 : index
    %78 = vector.load %arg2[%c11_57, %c0_58, %c0_59] : memref<32x8x1xf32, #tpu.memory_space<vmem>>, vector<1x8x1xf32>
    %79 = vector.shape_cast %78 : vector<1x8x1xf32> to vector<8x1xf32>
    %80 = vector.broadcast %79 : vector<8x1xf32> to vector<8x128xf32>
    %81 = arith.mulf %77, %80 : vector<8x128xf32>
    %82 = arith.addf %75, %81 : vector<8x128xf32>
    %c12 = arith.constant 12 : index
    %c0_60 = arith.constant 0 : index
    %c0_61 = arith.constant 0 : index
    %83 = vector.load %arg1[%c12, %c0_60, %c0_61] : memref<32x8x128xf32, #tpu.memory_space<vmem>>, vector<1x8x128xf32>
    %84 = vector.shape_cast %83 : vector<1x8x128xf32> to vector<8x128xf32>
    %c12_62 = arith.constant 12 : index
    %c0_63 = arith.constant 0 : index
    %c0_64 = arith.constant 0 : index
    %85 = vector.load %arg2[%c12_62, %c0_63, %c0_64] : memref<32x8x1xf32, #tpu.memory_space<vmem>>, vector<1x8x1xf32>
    %86 = vector.shape_cast %85 : vector<1x8x1xf32> to vector<8x1xf32>
    %87 = vector.broadcast %86 : vector<8x1xf32> to vector<8x128xf32>
    %88 = arith.mulf %84, %87 : vector<8x128xf32>
    %89 = arith.addf %82, %88 : vector<8x128xf32>
    %c13 = arith.constant 13 : index
    %c0_65 = arith.constant 0 : index
    %c0_66 = arith.constant 0 : index
    %90 = vector.load %arg1[%c13, %c0_65, %c0_66] : memref<32x8x128xf32, #tpu.memory_space<vmem>>, vector<1x8x128xf32>
    %91 = vector.shape_cast %90 : vector<1x8x128xf32> to vector<8x128xf32>
    %c13_67 = arith.constant 13 : index
    %c0_68 = arith.constant 0 : index
    %c0_69 = arith.constant 0 : index
    %92 = vector.load %arg2[%c13_67, %c0_68, %c0_69] : memref<32x8x1xf32, #tpu.memory_space<vmem>>, vector<1x8x1xf32>
    %93 = vector.shape_cast %92 : vector<1x8x1xf32> to vector<8x1xf32>
    %94 = vector.broadcast %93 : vector<8x1xf32> to vector<8x128xf32>
    %95 = arith.mulf %91, %94 : vector<8x128xf32>
    %96 = arith.addf %89, %95 : vector<8x128xf32>
    %c14 = arith.constant 14 : index
    %c0_70 = arith.constant 0 : index
    %c0_71 = arith.constant 0 : index
    %97 = vector.load %arg1[%c14, %c0_70, %c0_71] : memref<32x8x128xf32, #tpu.memory_space<vmem>>, vector<1x8x128xf32>
    %98 = vector.shape_cast %97 : vector<1x8x128xf32> to vector<8x128xf32>
    %c14_72 = arith.constant 14 : index
    %c0_73 = arith.constant 0 : index
    %c0_74 = arith.constant 0 : index
    %99 = vector.load %arg2[%c14_72, %c0_73, %c0_74] : memref<32x8x1xf32, #tpu.memory_space<vmem>>, vector<1x8x1xf32>
    %100 = vector.shape_cast %99 : vector<1x8x1xf32> to vector<8x1xf32>
    %101 = vector.broadcast %100 : vector<8x1xf32> to vector<8x128xf32>
    %102 = arith.mulf %98, %101 : vector<8x128xf32>
    %103 = arith.addf %96, %102 : vector<8x128xf32>
    %c15 = arith.constant 15 : index
    %c0_75 = arith.constant 0 : index
    %c0_76 = arith.constant 0 : index
    %104 = vector.load %arg1[%c15, %c0_75, %c0_76] : memref<32x8x128xf32, #tpu.memory_space<vmem>>, vector<1x8x128xf32>
    %105 = vector.shape_cast %104 : vector<1x8x128xf32> to vector<8x128xf32>
    %c15_77 = arith.constant 15 : index
    %c0_78 = arith.constant 0 : index
    %c0_79 = arith.constant 0 : index
    %106 = vector.load %arg2[%c15_77, %c0_78, %c0_79] : memref<32x8x1xf32, #tpu.memory_space<vmem>>, vector<1x8x1xf32>
    %107 = vector.shape_cast %106 : vector<1x8x1xf32> to vector<8x1xf32>
    %108 = vector.broadcast %107 : vector<8x1xf32> to vector<8x128xf32>
    %109 = arith.mulf %105, %108 : vector<8x128xf32>
    %110 = arith.addf %103, %109 : vector<8x128xf32>
    %c16 = arith.constant 16 : index
    %c0_80 = arith.constant 0 : index
    %c0_81 = arith.constant 0 : index
    %111 = vector.load %arg1[%c16, %c0_80, %c0_81] : memref<32x8x128xf32, #tpu.memory_space<vmem>>, vector<1x8x128xf32>
    %112 = vector.shape_cast %111 : vector<1x8x128xf32> to vector<8x128xf32>
    %c16_82 = arith.constant 16 : index
    %c0_83 = arith.constant 0 : index
    %c0_84 = arith.constant 0 : index
    %113 = vector.load %arg2[%c16_82, %c0_83, %c0_84] : memref<32x8x1xf32, #tpu.memory_space<vmem>>, vector<1x8x1xf32>
    %114 = vector.shape_cast %113 : vector<1x8x1xf32> to vector<8x1xf32>
    %115 = vector.broadcast %114 : vector<8x1xf32> to vector<8x128xf32>
    %116 = arith.mulf %112, %115 : vector<8x128xf32>
    %117 = arith.addf %110, %116 : vector<8x128xf32>
    %c17 = arith.constant 17 : index
    %c0_85 = arith.constant 0 : index
    %c0_86 = arith.constant 0 : index
    %118 = vector.load %arg1[%c17, %c0_85, %c0_86] : memref<32x8x128xf32, #tpu.memory_space<vmem>>, vector<1x8x128xf32>
    %119 = vector.shape_cast %118 : vector<1x8x128xf32> to vector<8x128xf32>
    %c17_87 = arith.constant 17 : index
    %c0_88 = arith.constant 0 : index
    %c0_89 = arith.constant 0 : index
    %120 = vector.load %arg2[%c17_87, %c0_88, %c0_89] : memref<32x8x1xf32, #tpu.memory_space<vmem>>, vector<1x8x1xf32>
    %121 = vector.shape_cast %120 : vector<1x8x1xf32> to vector<8x1xf32>
    %122 = vector.broadcast %121 : vector<8x1xf32> to vector<8x128xf32>
    %123 = arith.mulf %119, %122 : vector<8x128xf32>
    %124 = arith.addf %117, %123 : vector<8x128xf32>
    %c18 = arith.constant 18 : index
    %c0_90 = arith.constant 0 : index
    %c0_91 = arith.constant 0 : index
    %125 = vector.load %arg1[%c18, %c0_90, %c0_91] : memref<32x8x128xf32, #tpu.memory_space<vmem>>, vector<1x8x128xf32>
    %126 = vector.shape_cast %125 : vector<1x8x128xf32> to vector<8x128xf32>
    %c18_92 = arith.constant 18 : index
    %c0_93 = arith.constant 0 : index
    %c0_94 = arith.constant 0 : index
    %127 = vector.load %arg2[%c18_92, %c0_93, %c0_94] : memref<32x8x1xf32, #tpu.memory_space<vmem>>, vector<1x8x1xf32>
    %128 = vector.shape_cast %127 : vector<1x8x1xf32> to vector<8x1xf32>
    %129 = vector.broadcast %128 : vector<8x1xf32> to vector<8x128xf32>
    %130 = arith.mulf %126, %129 : vector<8x128xf32>
    %131 = arith.addf %124, %130 : vector<8x128xf32>
    %c19 = arith.constant 19 : index
    %c0_95 = arith.constant 0 : index
    %c0_96 = arith.constant 0 : index
    %132 = vector.load %arg1[%c19, %c0_95, %c0_96] : memref<32x8x128xf32, #tpu.memory_space<vmem>>, vector<1x8x128xf32>
    %133 = vector.shape_cast %132 : vector<1x8x128xf32> to vector<8x128xf32>
    %c19_97 = arith.constant 19 : index
    %c0_98 = arith.constant 0 : index
    %c0_99 = arith.constant 0 : index
    %134 = vector.load %arg2[%c19_97, %c0_98, %c0_99] : memref<32x8x1xf32, #tpu.memory_space<vmem>>, vector<1x8x1xf32>
    %135 = vector.shape_cast %134 : vector<1x8x1xf32> to vector<8x1xf32>
    %136 = vector.broadcast %135 : vector<8x1xf32> to vector<8x128xf32>
    %137 = arith.mulf %133, %136 : vector<8x128xf32>
    %138 = arith.addf %131, %137 : vector<8x128xf32>
    %c20 = arith.constant 20 : index
    %c0_100 = arith.constant 0 : index
    %c0_101 = arith.constant 0 : index
    %139 = vector.load %arg1[%c20, %c0_100, %c0_101] : memref<32x8x128xf32, #tpu.memory_space<vmem>>, vector<1x8x128xf32>
    %140 = vector.shape_cast %139 : vector<1x8x128xf32> to vector<8x128xf32>
    %c20_102 = arith.constant 20 : index
    %c0_103 = arith.constant 0 : index
    %c0_104 = arith.constant 0 : index
    %141 = vector.load %arg2[%c20_102, %c0_103, %c0_104] : memref<32x8x1xf32, #tpu.memory_space<vmem>>, vector<1x8x1xf32>
    %142 = vector.shape_cast %141 : vector<1x8x1xf32> to vector<8x1xf32>
    %143 = vector.broadcast %142 : vector<8x1xf32> to vector<8x128xf32>
    %144 = arith.mulf %140, %143 : vector<8x128xf32>
    %145 = arith.addf %138, %144 : vector<8x128xf32>
    %c21 = arith.constant 21 : index
    %c0_105 = arith.constant 0 : index
    %c0_106 = arith.constant 0 : index
    %146 = vector.load %arg1[%c21, %c0_105, %c0_106] : memref<32x8x128xf32, #tpu.memory_space<vmem>>, vector<1x8x128xf32>
    %147 = vector.shape_cast %146 : vector<1x8x128xf32> to vector<8x128xf32>
    %c21_107 = arith.constant 21 : index
    %c0_108 = arith.constant 0 : index
    %c0_109 = arith.constant 0 : index
    %148 = vector.load %arg2[%c21_107, %c0_108, %c0_109] : memref<32x8x1xf32, #tpu.memory_space<vmem>>, vector<1x8x1xf32>
    %149 = vector.shape_cast %148 : vector<1x8x1xf32> to vector<8x1xf32>
    %150 = vector.broadcast %149 : vector<8x1xf32> to vector<8x128xf32>
    %151 = arith.mulf %147, %150 : vector<8x128xf32>
    %152 = arith.addf %145, %151 : vector<8x128xf32>
    %c22 = arith.constant 22 : index
    %c0_110 = arith.constant 0 : index
    %c0_111 = arith.constant 0 : index
    %153 = vector.load %arg1[%c22, %c0_110, %c0_111] : memref<32x8x128xf32, #tpu.memory_space<vmem>>, vector<1x8x128xf32>
    %154 = vector.shape_cast %153 : vector<1x8x128xf32> to vector<8x128xf32>
    %c22_112 = arith.constant 22 : index
    %c0_113 = arith.constant 0 : index
    %c0_114 = arith.constant 0 : index
    %155 = vector.load %arg2[%c22_112, %c0_113, %c0_114] : memref<32x8x1xf32, #tpu.memory_space<vmem>>, vector<1x8x1xf32>
    %156 = vector.shape_cast %155 : vector<1x8x1xf32> to vector<8x1xf32>
    %157 = vector.broadcast %156 : vector<8x1xf32> to vector<8x128xf32>
    %158 = arith.mulf %154, %157 : vector<8x128xf32>
    %159 = arith.addf %152, %158 : vector<8x128xf32>
    %c23 = arith.constant 23 : index
    %c0_115 = arith.constant 0 : index
    %c0_116 = arith.constant 0 : index
    %160 = vector.load %arg1[%c23, %c0_115, %c0_116] : memref<32x8x128xf32, #tpu.memory_space<vmem>>, vector<1x8x128xf32>
    %161 = vector.shape_cast %160 : vector<1x8x128xf32> to vector<8x128xf32>
    %c23_117 = arith.constant 23 : index
    %c0_118 = arith.constant 0 : index
    %c0_119 = arith.constant 0 : index
    %162 = vector.load %arg2[%c23_117, %c0_118, %c0_119] : memref<32x8x1xf32, #tpu.memory_space<vmem>>, vector<1x8x1xf32>
    %163 = vector.shape_cast %162 : vector<1x8x1xf32> to vector<8x1xf32>
    %164 = vector.broadcast %163 : vector<8x1xf32> to vector<8x128xf32>
    %165 = arith.mulf %161, %164 : vector<8x128xf32>
    %166 = arith.addf %159, %165 : vector<8x128xf32>
    %c24 = arith.constant 24 : index
    %c0_120 = arith.constant 0 : index
    %c0_121 = arith.constant 0 : index
    %167 = vector.load %arg1[%c24, %c0_120, %c0_121] : memref<32x8x128xf32, #tpu.memory_space<vmem>>, vector<1x8x128xf32>
    %168 = vector.shape_cast %167 : vector<1x8x128xf32> to vector<8x128xf32>
    %c24_122 = arith.constant 24 : index
    %c0_123 = arith.constant 0 : index
    %c0_124 = arith.constant 0 : index
    %169 = vector.load %arg2[%c24_122, %c0_123, %c0_124] : memref<32x8x1xf32, #tpu.memory_space<vmem>>, vector<1x8x1xf32>
    %170 = vector.shape_cast %169 : vector<1x8x1xf32> to vector<8x1xf32>
    %171 = vector.broadcast %170 : vector<8x1xf32> to vector<8x128xf32>
    %172 = arith.mulf %168, %171 : vector<8x128xf32>
    %173 = arith.addf %166, %172 : vector<8x128xf32>
    %c25 = arith.constant 25 : index
    %c0_125 = arith.constant 0 : index
    %c0_126 = arith.constant 0 : index
    %174 = vector.load %arg1[%c25, %c0_125, %c0_126] : memref<32x8x128xf32, #tpu.memory_space<vmem>>, vector<1x8x128xf32>
    %175 = vector.shape_cast %174 : vector<1x8x128xf32> to vector<8x128xf32>
    %c25_127 = arith.constant 25 : index
    %c0_128 = arith.constant 0 : index
    %c0_129 = arith.constant 0 : index
    %176 = vector.load %arg2[%c25_127, %c0_128, %c0_129] : memref<32x8x1xf32, #tpu.memory_space<vmem>>, vector<1x8x1xf32>
    %177 = vector.shape_cast %176 : vector<1x8x1xf32> to vector<8x1xf32>
    %178 = vector.broadcast %177 : vector<8x1xf32> to vector<8x128xf32>
    %179 = arith.mulf %175, %178 : vector<8x128xf32>
    %180 = arith.addf %173, %179 : vector<8x128xf32>
    %c26 = arith.constant 26 : index
    %c0_130 = arith.constant 0 : index
    %c0_131 = arith.constant 0 : index
    %181 = vector.load %arg1[%c26, %c0_130, %c0_131] : memref<32x8x128xf32, #tpu.memory_space<vmem>>, vector<1x8x128xf32>
    %182 = vector.shape_cast %181 : vector<1x8x128xf32> to vector<8x128xf32>
    %c26_132 = arith.constant 26 : index
    %c0_133 = arith.constant 0 : index
    %c0_134 = arith.constant 0 : index
    %183 = vector.load %arg2[%c26_132, %c0_133, %c0_134] : memref<32x8x1xf32, #tpu.memory_space<vmem>>, vector<1x8x1xf32>
    %184 = vector.shape_cast %183 : vector<1x8x1xf32> to vector<8x1xf32>
    %185 = vector.broadcast %184 : vector<8x1xf32> to vector<8x128xf32>
    %186 = arith.mulf %182, %185 : vector<8x128xf32>
    %187 = arith.addf %180, %186 : vector<8x128xf32>
    %c27 = arith.constant 27 : index
    %c0_135 = arith.constant 0 : index
    %c0_136 = arith.constant 0 : index
    %188 = vector.load %arg1[%c27, %c0_135, %c0_136] : memref<32x8x128xf32, #tpu.memory_space<vmem>>, vector<1x8x128xf32>
    %189 = vector.shape_cast %188 : vector<1x8x128xf32> to vector<8x128xf32>
    %c27_137 = arith.constant 27 : index
    %c0_138 = arith.constant 0 : index
    %c0_139 = arith.constant 0 : index
    %190 = vector.load %arg2[%c27_137, %c0_138, %c0_139] : memref<32x8x1xf32, #tpu.memory_space<vmem>>, vector<1x8x1xf32>
    %191 = vector.shape_cast %190 : vector<1x8x1xf32> to vector<8x1xf32>
    %192 = vector.broadcast %191 : vector<8x1xf32> to vector<8x128xf32>
    %193 = arith.mulf %189, %192 : vector<8x128xf32>
    %194 = arith.addf %187, %193 : vector<8x128xf32>
    %c28 = arith.constant 28 : index
    %c0_140 = arith.constant 0 : index
    %c0_141 = arith.constant 0 : index
    %195 = vector.load %arg1[%c28, %c0_140, %c0_141] : memref<32x8x128xf32, #tpu.memory_space<vmem>>, vector<1x8x128xf32>
    %196 = vector.shape_cast %195 : vector<1x8x128xf32> to vector<8x128xf32>
    %c28_142 = arith.constant 28 : index
    %c0_143 = arith.constant 0 : index
    %c0_144 = arith.constant 0 : index
    %197 = vector.load %arg2[%c28_142, %c0_143, %c0_144] : memref<32x8x1xf32, #tpu.memory_space<vmem>>, vector<1x8x1xf32>
    %198 = vector.shape_cast %197 : vector<1x8x1xf32> to vector<8x1xf32>
    %199 = vector.broadcast %198 : vector<8x1xf32> to vector<8x128xf32>
    %200 = arith.mulf %196, %199 : vector<8x128xf32>
    %201 = arith.addf %194, %200 : vector<8x128xf32>
    %c29 = arith.constant 29 : index
    %c0_145 = arith.constant 0 : index
    %c0_146 = arith.constant 0 : index
    %202 = vector.load %arg1[%c29, %c0_145, %c0_146] : memref<32x8x128xf32, #tpu.memory_space<vmem>>, vector<1x8x128xf32>
    %203 = vector.shape_cast %202 : vector<1x8x128xf32> to vector<8x128xf32>
    %c29_147 = arith.constant 29 : index
    %c0_148 = arith.constant 0 : index
    %c0_149 = arith.constant 0 : index
    %204 = vector.load %arg2[%c29_147, %c0_148, %c0_149] : memref<32x8x1xf32, #tpu.memory_space<vmem>>, vector<1x8x1xf32>
    %205 = vector.shape_cast %204 : vector<1x8x1xf32> to vector<8x1xf32>
    %206 = vector.broadcast %205 : vector<8x1xf32> to vector<8x128xf32>
    %207 = arith.mulf %203, %206 : vector<8x128xf32>
    %208 = arith.addf %201, %207 : vector<8x128xf32>
    %c30 = arith.constant 30 : index
    %c0_150 = arith.constant 0 : index
    %c0_151 = arith.constant 0 : index
    %209 = vector.load %arg1[%c30, %c0_150, %c0_151] : memref<32x8x128xf32, #tpu.memory_space<vmem>>, vector<1x8x128xf32>
    %210 = vector.shape_cast %209 : vector<1x8x128xf32> to vector<8x128xf32>
    %c30_152 = arith.constant 30 : index
    %c0_153 = arith.constant 0 : index
    %c0_154 = arith.constant 0 : index
    %211 = vector.load %arg2[%c30_152, %c0_153, %c0_154] : memref<32x8x1xf32, #tpu.memory_space<vmem>>, vector<1x8x1xf32>
    %212 = vector.shape_cast %211 : vector<1x8x1xf32> to vector<8x1xf32>
    %213 = vector.broadcast %212 : vector<8x1xf32> to vector<8x128xf32>
    %214 = arith.mulf %210, %213 : vector<8x128xf32>
    %215 = arith.addf %208, %214 : vector<8x128xf32>
    %c31 = arith.constant 31 : index
    %c0_155 = arith.constant 0 : index
    %c0_156 = arith.constant 0 : index
    %216 = vector.load %arg1[%c31, %c0_155, %c0_156] : memref<32x8x128xf32, #tpu.memory_space<vmem>>, vector<1x8x128xf32>
    %217 = vector.shape_cast %216 : vector<1x8x128xf32> to vector<8x128xf32>
    %c31_157 = arith.constant 31 : index
    %c0_158 = arith.constant 0 : index
    %c0_159 = arith.constant 0 : index
    %218 = vector.load %arg2[%c31_157, %c0_158, %c0_159] : memref<32x8x1xf32, #tpu.memory_space<vmem>>, vector<1x8x1xf32>
    %219 = vector.shape_cast %218 : vector<1x8x1xf32> to vector<8x1xf32>
    %220 = vector.broadcast %219 : vector<8x1xf32> to vector<8x128xf32>
    %221 = arith.mulf %217, %220 : vector<8x128xf32>
    %222 = arith.addf %215, %221 : vector<8x128xf32>
    %c0_160 = arith.constant 0 : index
    %c0_161 = arith.constant 0 : index
    %223 = vector.load %arg3[%c0_160, %c0_161] : memref<8x1xf32, #tpu.memory_space<vmem>>, vector<8x1xf32>
    %224 = vector.broadcast %223 : vector<8x1xf32> to vector<8x128xf32>
    %225 = arith.addf %222, %224 : vector<8x128xf32>
    %c0_162 = arith.constant 0 : index
    %c0_163 = arith.constant 0 : index
    %226 = vector.load %arg4[%c0_162, %c0_163] : memref<8x128xf32, #tpu.memory_space<vmem>>, vector<8x128xf32>
    tpu.vector_store %arg4[%c0_162, %c0_163], %225 {strides = array<i32>} : memref<8x128xf32, #tpu.memory_space<vmem>>, vector<8x128xf32>,
    return
  }
  func.func @transform_0(%arg0: i32) -> (i32, i32, i32) {
    %c0_i32 = arith.constant 0 : i32
    %c0_i32_0 = arith.constant 0 : i32
    %c0_i32_1 = arith.constant 0 : i32
    return %c0_i32, %c0_i32_0, %arg0 : i32, i32, i32
  }
  func.func @transform_1(%arg0: i32) -> (i32, i32, i32) {
    %c0_i32 = arith.constant 0 : i32
    %c0_i32_0 = arith.constant 0 : i32
    %c0_i32_1 = arith.constant 0 : i32
    %c0_i32_2 = arith.constant 0 : i32
    return %c0_i32, %c0_i32_0, %c0_i32_1 : i32, i32, i32
  }
  func.func @transform_2(%arg0: i32) -> (i32, i32) {
    %c0_i32 = arith.constant 0 : i32
    %c0_i32_0 = arith.constant 0 : i32
    %c0_i32_1 = arith.constant 0 : i32
    return %c0_i32, %c0_i32_0 : i32, i32
  }
  func.func @transform_3(%arg0: i32) -> (i32, i32) {
    %c0_i32 = arith.constant 0 : i32
    %c0_i32_0 = arith.constant 0 : i32
    return %c0_i32, %arg0 : i32, i32
  }
}

module attributes {stable_mosaic.version = 11 : i64} {
  func.func @kernel(%arg0: i32, %arg1: memref<8x1024xbf16, #tpu.memory_space<vmem>>, %arg2: memref<24x8xf32, #tpu.memory_space<vmem>>, %arg3: memref<24x1xf32, #tpu.memory_space<vmem>>, %arg4: memref<8x8xf32, #tpu.memory_space<vmem>>, %arg5: memref<8x1xf32, #tpu.memory_space<vmem>>, %arg6: memref<4x4x8x1xf32, #tpu.memory_space<vmem>>, %arg7: memref<8x8xf32, #tpu.memory_space<vmem>>, %arg8: memref<8x1xf32, #tpu.memory_space<vmem>>, %arg9: memref<16x8xf32, #tpu.memory_space<vmem>>, %arg10: memref<16x8xf32, #tpu.memory_space<vmem>>, %arg11: memref<16x1xf32, #tpu.memory_space<vmem>>, %arg12: memref<16x128xf32, #tpu.memory_space<vmem>>) attributes {dimension_semantics = [#tpu.dimension_semantics<parallel>], iteration_bounds = array<i64: 1>, scalar_prefetch = 0 : i64, scratch_operands = 0 : i64, tpu.core_type = #tpu.core_type<tc>, window_params = [{transform_indices = @transform_0, window_bounds = array<i64: 8, 1024>}, {pipeline_mode = #tpu.pipeline_mode<synchronous>, transform_indices = @transform_1, window_bounds = array<i64: 24, 8>}, {pipeline_mode = #tpu.pipeline_mode<synchronous>, transform_indices = @transform_2, window_bounds = array<i64: 24, 1>}, {pipeline_mode = #tpu.pipeline_mode<synchronous>, transform_indices = @transform_3, window_bounds = array<i64: 8, 8>}, {pipeline_mode = #tpu.pipeline_mode<synchronous>, transform_indices = @transform_4, window_bounds = array<i64: 8, 1>}, {pipeline_mode = #tpu.pipeline_mode<synchronous>, transform_indices = @transform_5, window_bounds = array<i64: 4, 4, 8, 1>}, {pipeline_mode = #tpu.pipeline_mode<synchronous>, transform_indices = @transform_6, window_bounds = array<i64: 8, 8>}, {pipeline_mode = #tpu.pipeline_mode<synchronous>, transform_indices = @transform_7, window_bounds = array<i64: 8, 1>}, {pipeline_mode = #tpu.pipeline_mode<synchronous>, transform_indices = @transform_8, window_bounds = array<i64: 16, 8>}, {pipeline_mode = #tpu.pipeline_mode<synchronous>, transform_indices = @transform_9, window_bounds = array<i64: 16, 8>}, {pipeline_mode = #tpu.pipeline_mode<synchronous>, transform_indices = @transform_10, window_bounds = array<i64: 16, 1>}, {transform_indices = @transform_11, window_bounds = array<i64: 16, 128>}]} {
    %c0 = arith.constant 0 : index
    %c0_0 = arith.constant 0 : index
    %0 = vector.load %arg1[%c0, %c0_0] : memref<8x1024xbf16, #tpu.memory_space<vmem>>, vector<8x1024xbf16>
    %c0_1 = arith.constant 0 : index
    %c0_2 = arith.constant 0 : index
    %1 = vector.load %arg4[%c0_1, %c0_2] : memref<8x8xf32, #tpu.memory_space<vmem>>, vector<8x8xf32>
    %c0_3 = arith.constant 0 : index
    %c0_4 = arith.constant 0 : index
    %2 = vector.load %arg2[%c0_3, %c0_4] : memref<24x8xf32, #tpu.memory_space<vmem>>, vector<24x8xf32>
    %3 = arith.truncf %2 : vector<24x8xf32> to vector<24x8xbf16>
    %cst = arith.constant dense<0.000000e+00> : vector<24x1024xf32>
    %4 = tpu.matmul %3, %0, %cst {dimension_numbers = #tpu.dot_dimension_numbers<[1], [0], [0], [1], [0, 0, 1, 1], [], []>} : vector<24x8xbf16>, vector<8x1024xbf16>, vector<24x1024xf32> -> vector<24x1024xf32>
    %c0_5 = arith.constant 0 : index
    %c0_6 = arith.constant 0 : index
    %5 = vector.load %arg3[%c0_5, %c0_6] : memref<24x1xf32, #tpu.memory_space<vmem>>, vector<24x1xf32>
    %6 = vector.broadcast %5 : vector<24x1xf32> to vector<24x1024xf32>
    %7 = arith.addf %4, %6 : vector<24x1024xf32>
    %8 = vector.extract_strided_slice %7 {offsets = [0, 0], sizes = [8, 1024], strides = [1, 1]} : vector<24x1024xf32> to vector<8x1024xf32>
    %9 = vector.extract_strided_slice %7 {offsets = [8, 0], sizes = [8, 1024], strides = [1, 1]} : vector<24x1024xf32> to vector<8x1024xf32>
    %10 = vector.extract_strided_slice %7 {offsets = [16, 0], sizes = [8, 1024], strides = [1, 1]} : vector<24x1024xf32> to vector<8x1024xf32>
    %11 = arith.mulf %8, %8 : vector<8x1024xf32>
    %cst_7 = arith.constant dense<0.000000e+00> : vector<8x1024xf32>
    %12 = tpu.matmul %1, %11, %cst_7 {dimension_numbers = #tpu.dot_dimension_numbers<[1], [0], [0], [1], [0, 0, 1, 1], [], []>} : vector<8x8xf32>, vector<8x1024xf32>, vector<8x1024xf32> -> vector<8x1024xf32>
    %cst_8 = arith.constant 1.000000e-24 : f32
    %13 = vector.broadcast %cst_8 : f32 to vector<8x1024xf32>
    %14 = arith.maximumf %12, %13 : vector<8x1024xf32>
    %15 = math.rsqrt %14 : vector<8x1024xf32>
    %16 = arith.mulf %8, %15 : vector<8x1024xf32>
    %17 = arith.mulf %9, %9 : vector<8x1024xf32>
    %cst_9 = arith.constant dense<0.000000e+00> : vector<8x1024xf32>
    %18 = tpu.matmul %1, %17, %cst_9 {dimension_numbers = #tpu.dot_dimension_numbers<[1], [0], [0], [1], [0, 0, 1, 1], [], []>} : vector<8x8xf32>, vector<8x1024xf32>, vector<8x1024xf32> -> vector<8x1024xf32>
    %cst_10 = arith.constant 1.000000e-24 : f32
    %19 = vector.broadcast %cst_10 : f32 to vector<8x1024xf32>
    %20 = arith.maximumf %18, %19 : vector<8x1024xf32>
    %21 = math.rsqrt %20 : vector<8x1024xf32>
    %22 = arith.mulf %9, %21 : vector<8x1024xf32>
    %c0_11 = arith.constant 0 : index
    %c0_12 = arith.constant 0 : index
    %23 = vector.load %arg5[%c0_11, %c0_12] : memref<8x1xf32, #tpu.memory_space<vmem>>, vector<8x1xf32>
    %24 = vector.broadcast %23 : vector<8x1xf32> to vector<8x1024xf32>
    %25 = arith.mulf %16, %24 : vector<8x1024xf32>
    %cst_13 = arith.constant 0.000000e+00 : f32
    %26 = vector.broadcast %cst_13 : f32 to vector<8x256xf32>
    %27 = vector.extract_strided_slice %25 {offsets = [0, 0], sizes = [8, 256], strides = [1, 1]} : vector<8x1024xf32> to vector<8x256xf32>
    %28 = vector.extract_strided_slice %22 {offsets = [0, 0], sizes = [8, 256], strides = [1, 1]} : vector<8x1024xf32> to vector<8x256xf32>
    %29 = arith.mulf %27, %28 : vector<8x256xf32>
    %cst_14 = arith.constant dense<0.000000e+00> : vector<8x256xf32>
    %30 = tpu.matmul %1, %29, %cst_14 {dimension_numbers = #tpu.dot_dimension_numbers<[1], [0], [0], [1], [0, 0, 1, 1], [], []>} : vector<8x8xf32>, vector<8x256xf32>, vector<8x256xf32> -> vector<8x256xf32>
    %c0_15 = arith.constant 0 : index
    %c0_16 = arith.constant 0 : index
    %c0_17 = arith.constant 0 : index
    %c0_18 = arith.constant 0 : index
    %31 = vector.load %arg6[%c0_15, %c0_16, %c0_17, %c0_18] : memref<4x4x8x1xf32, #tpu.memory_space<vmem>>, vector<1x1x8x1xf32>
    %32 = vector.shape_cast %31 : vector<1x1x8x1xf32> to vector<8x1xf32>
    %33 = vector.broadcast %32 : vector<8x1xf32> to vector<8x256xf32>
    %34 = arith.addf %30, %33 : vector<8x256xf32>
    %35 = vector.extract_strided_slice %22 {offsets = [0, 256], sizes = [8, 256], strides = [1, 1]} : vector<8x1024xf32> to vector<8x256xf32>
    %36 = arith.mulf %27, %35 : vector<8x256xf32>
    %cst_19 = arith.constant dense<0.000000e+00> : vector<8x256xf32>
    %37 = tpu.matmul %1, %36, %cst_19 {dimension_numbers = #tpu.dot_dimension_numbers<[1], [0], [0], [1], [0, 0, 1, 1], [], []>} : vector<8x8xf32>, vector<8x256xf32>, vector<8x256xf32> -> vector<8x256xf32>
    %c0_20 = arith.constant 0 : index
    %c1 = arith.constant 1 : index
    %c0_21 = arith.constant 0 : index
    %c0_22 = arith.constant 0 : index
    %38 = vector.load %arg6[%c0_20, %c1, %c0_21, %c0_22] : memref<4x4x8x1xf32, #tpu.memory_space<vmem>>, vector<1x1x8x1xf32>
    %39 = vector.shape_cast %38 : vector<1x1x8x1xf32> to vector<8x1xf32>
    %40 = vector.broadcast %39 : vector<8x1xf32> to vector<8x256xf32>
    %41 = arith.addf %37, %40 : vector<8x256xf32>
    %42 = vector.extract_strided_slice %22 {offsets = [0, 512], sizes = [8, 256], strides = [1, 1]} : vector<8x1024xf32> to vector<8x256xf32>
    %43 = arith.mulf %27, %42 : vector<8x256xf32>
    %cst_23 = arith.constant dense<0.000000e+00> : vector<8x256xf32>
    %44 = tpu.matmul %1, %43, %cst_23 {dimension_numbers = #tpu.dot_dimension_numbers<[1], [0], [0], [1], [0, 0, 1, 1], [], []>} : vector<8x8xf32>, vector<8x256xf32>, vector<8x256xf32> -> vector<8x256xf32>
    %c0_24 = arith.constant 0 : index
    %c2 = arith.constant 2 : index
    %c0_25 = arith.constant 0 : index
    %c0_26 = arith.constant 0 : index
    %45 = vector.load %arg6[%c0_24, %c2, %c0_25, %c0_26] : memref<4x4x8x1xf32, #tpu.memory_space<vmem>>, vector<1x1x8x1xf32>
    %46 = vector.shape_cast %45 : vector<1x1x8x1xf32> to vector<8x1xf32>
    %47 = vector.broadcast %46 : vector<8x1xf32> to vector<8x256xf32>
    %48 = arith.addf %44, %47 : vector<8x256xf32>
    %49 = vector.extract_strided_slice %22 {offsets = [0, 768], sizes = [8, 256], strides = [1, 1]} : vector<8x1024xf32> to vector<8x256xf32>
    %50 = arith.mulf %27, %49 : vector<8x256xf32>
    %cst_27 = arith.constant dense<0.000000e+00> : vector<8x256xf32>
    %51 = tpu.matmul %1, %50, %cst_27 {dimension_numbers = #tpu.dot_dimension_numbers<[1], [0], [0], [1], [0, 0, 1, 1], [], []>} : vector<8x8xf32>, vector<8x256xf32>, vector<8x256xf32> -> vector<8x256xf32>
    %c0_28 = arith.constant 0 : index
    %c3 = arith.constant 3 : index
    %c0_29 = arith.constant 0 : index
    %c0_30 = arith.constant 0 : index
    %52 = vector.load %arg6[%c0_28, %c3, %c0_29, %c0_30] : memref<4x4x8x1xf32, #tpu.memory_space<vmem>>, vector<1x1x8x1xf32>
    %53 = vector.shape_cast %52 : vector<1x1x8x1xf32> to vector<8x1xf32>
    %54 = vector.broadcast %53 : vector<8x1xf32> to vector<8x256xf32>
    %55 = arith.addf %51, %54 : vector<8x256xf32>
    %56 = arith.maximumf %34, %41 : vector<8x256xf32>
    %57 = arith.maximumf %56, %48 : vector<8x256xf32>
    %58 = arith.maximumf %57, %55 : vector<8x256xf32>
    %59 = arith.subf %34, %58 : vector<8x256xf32>
    %60 = math.exp %59 : vector<8x256xf32>
    %61 = arith.subf %41, %58 : vector<8x256xf32>
    %62 = math.exp %61 : vector<8x256xf32>
    %63 = arith.subf %48, %58 : vector<8x256xf32>
    %64 = math.exp %63 : vector<8x256xf32>
    %65 = arith.subf %55, %58 : vector<8x256xf32>
    %66 = math.exp %65 : vector<8x256xf32>
    %67 = arith.addf %60, %62 : vector<8x256xf32>
    %68 = arith.addf %67, %64 : vector<8x256xf32>
    %69 = arith.addf %68, %66 : vector<8x256xf32>
    %70 = tpu.reciprocal %69 {approx = true} : vector<8x256xf32> -> vector<8x256xf32>
    %71 = vector.extract_strided_slice %10 {offsets = [0, 0], sizes = [8, 256], strides = [1, 1]} : vector<8x1024xf32> to vector<8x256xf32>
    %72 = arith.mulf %60, %71 : vector<8x256xf32>
    %73 = vector.extract_strided_slice %10 {offsets = [0, 256], sizes = [8, 256], strides = [1, 1]} : vector<8x1024xf32> to vector<8x256xf32>
    %74 = arith.mulf %62, %73 : vector<8x256xf32>
    %75 = arith.addf %72, %74 : vector<8x256xf32>
    %76 = vector.extract_strided_slice %10 {offsets = [0, 512], sizes = [8, 256], strides = [1, 1]} : vector<8x1024xf32> to vector<8x256xf32>
    %77 = arith.mulf %64, %76 : vector<8x256xf32>
    %78 = arith.addf %75, %77 : vector<8x256xf32>
    %79 = vector.extract_strided_slice %10 {offsets = [0, 768], sizes = [8, 256], strides = [1, 1]} : vector<8x1024xf32> to vector<8x256xf32>
    %80 = arith.mulf %66, %79 : vector<8x256xf32>
    %81 = arith.addf %78, %80 : vector<8x256xf32>
    %82 = arith.mulf %81, %70 : vector<8x256xf32>
    %83 = arith.addf %26, %82 : vector<8x256xf32>
    %84 = vector.extract_strided_slice %25 {offsets = [0, 256], sizes = [8, 256], strides = [1, 1]} : vector<8x1024xf32> to vector<8x256xf32>
    %85 = vector.extract_strided_slice %22 {offsets = [0, 0], sizes = [8, 256], strides = [1, 1]} : vector<8x1024xf32> to vector<8x256xf32>
    %86 = arith.mulf %84, %85 : vector<8x256xf32>
    %cst_31 = arith.constant dense<0.000000e+00> : vector<8x256xf32>
    %87 = tpu.matmul %1, %86, %cst_31 {dimension_numbers = #tpu.dot_dimension_numbers<[1], [0], [0], [1], [0, 0, 1, 1], [], []>} : vector<8x8xf32>, vector<8x256xf32>, vector<8x256xf32> -> vector<8x256xf32>
    %c1_32 = arith.constant 1 : index
    %c0_33 = arith.constant 0 : index
    %c0_34 = arith.constant 0 : index
    %c0_35 = arith.constant 0 : index
    %88 = vector.load %arg6[%c1_32, %c0_33, %c0_34, %c0_35] : memref<4x4x8x1xf32, #tpu.memory_space<vmem>>, vector<1x1x8x1xf32>
    %89 = vector.shape_cast %88 : vector<1x1x8x1xf32> to vector<8x1xf32>
    %90 = vector.broadcast %89 : vector<8x1xf32> to vector<8x256xf32>
    %91 = arith.addf %87, %90 : vector<8x256xf32>
    %92 = vector.extract_strided_slice %22 {offsets = [0, 256], sizes = [8, 256], strides = [1, 1]} : vector<8x1024xf32> to vector<8x256xf32>
    %93 = arith.mulf %84, %92 : vector<8x256xf32>
    %cst_36 = arith.constant dense<0.000000e+00> : vector<8x256xf32>
    %94 = tpu.matmul %1, %93, %cst_36 {dimension_numbers = #tpu.dot_dimension_numbers<[1], [0], [0], [1], [0, 0, 1, 1], [], []>} : vector<8x8xf32>, vector<8x256xf32>, vector<8x256xf32> -> vector<8x256xf32>
    %c1_37 = arith.constant 1 : index
    %c1_38 = arith.constant 1 : index
    %c0_39 = arith.constant 0 : index
    %c0_40 = arith.constant 0 : index
    %95 = vector.load %arg6[%c1_37, %c1_38, %c0_39, %c0_40] : memref<4x4x8x1xf32, #tpu.memory_space<vmem>>, vector<1x1x8x1xf32>
    %96 = vector.shape_cast %95 : vector<1x1x8x1xf32> to vector<8x1xf32>
    %97 = vector.broadcast %96 : vector<8x1xf32> to vector<8x256xf32>
    %98 = arith.addf %94, %97 : vector<8x256xf32>
    %99 = vector.extract_strided_slice %22 {offsets = [0, 512], sizes = [8, 256], strides = [1, 1]} : vector<8x1024xf32> to vector<8x256xf32>
    %100 = arith.mulf %84, %99 : vector<8x256xf32>
    %cst_41 = arith.constant dense<0.000000e+00> : vector<8x256xf32>
    %101 = tpu.matmul %1, %100, %cst_41 {dimension_numbers = #tpu.dot_dimension_numbers<[1], [0], [0], [1], [0, 0, 1, 1], [], []>} : vector<8x8xf32>, vector<8x256xf32>, vector<8x256xf32> -> vector<8x256xf32>
    %c1_42 = arith.constant 1 : index
    %c2_43 = arith.constant 2 : index
    %c0_44 = arith.constant 0 : index
    %c0_45 = arith.constant 0 : index
    %102 = vector.load %arg6[%c1_42, %c2_43, %c0_44, %c0_45] : memref<4x4x8x1xf32, #tpu.memory_space<vmem>>, vector<1x1x8x1xf32>
    %103 = vector.shape_cast %102 : vector<1x1x8x1xf32> to vector<8x1xf32>
    %104 = vector.broadcast %103 : vector<8x1xf32> to vector<8x256xf32>
    %105 = arith.addf %101, %104 : vector<8x256xf32>
    %106 = vector.extract_strided_slice %22 {offsets = [0, 768], sizes = [8, 256], strides = [1, 1]} : vector<8x1024xf32> to vector<8x256xf32>
    %107 = arith.mulf %84, %106 : vector<8x256xf32>
    %cst_46 = arith.constant dense<0.000000e+00> : vector<8x256xf32>
    %108 = tpu.matmul %1, %107, %cst_46 {dimension_numbers = #tpu.dot_dimension_numbers<[1], [0], [0], [1], [0, 0, 1, 1], [], []>} : vector<8x8xf32>, vector<8x256xf32>, vector<8x256xf32> -> vector<8x256xf32>
    %c1_47 = arith.constant 1 : index
    %c3_48 = arith.constant 3 : index
    %c0_49 = arith.constant 0 : index
    %c0_50 = arith.constant 0 : index
    %109 = vector.load %arg6[%c1_47, %c3_48, %c0_49, %c0_50] : memref<4x4x8x1xf32, #tpu.memory_space<vmem>>, vector<1x1x8x1xf32>
    %110 = vector.shape_cast %109 : vector<1x1x8x1xf32> to vector<8x1xf32>
    %111 = vector.broadcast %110 : vector<8x1xf32> to vector<8x256xf32>
    %112 = arith.addf %108, %111 : vector<8x256xf32>
    %113 = arith.maximumf %91, %98 : vector<8x256xf32>
    %114 = arith.maximumf %113, %105 : vector<8x256xf32>
    %115 = arith.maximumf %114, %112 : vector<8x256xf32>
    %116 = arith.subf %91, %115 : vector<8x256xf32>
    %117 = math.exp %116 : vector<8x256xf32>
    %118 = arith.subf %98, %115 : vector<8x256xf32>
    %119 = math.exp %118 : vector<8x256xf32>
    %120 = arith.subf %105, %115 : vector<8x256xf32>
    %121 = math.exp %120 : vector<8x256xf32>
    %122 = arith.subf %112, %115 : vector<8x256xf32>
    %123 = math.exp %122 : vector<8x256xf32>
    %124 = arith.addf %117, %119 : vector<8x256xf32>
    %125 = arith.addf %124, %121 : vector<8x256xf32>
    %126 = arith.addf %125, %123 : vector<8x256xf32>
    %127 = tpu.reciprocal %126 {approx = true} : vector<8x256xf32> -> vector<8x256xf32>
    %128 = vector.extract_strided_slice %10 {offsets = [0, 0], sizes = [8, 256], strides = [1, 1]} : vector<8x1024xf32> to vector<8x256xf32>
    %129 = arith.mulf %117, %128 : vector<8x256xf32>
    %130 = vector.extract_strided_slice %10 {offsets = [0, 256], sizes = [8, 256], strides = [1, 1]} : vector<8x1024xf32> to vector<8x256xf32>
    %131 = arith.mulf %119, %130 : vector<8x256xf32>
    %132 = arith.addf %129, %131 : vector<8x256xf32>
    %133 = vector.extract_strided_slice %10 {offsets = [0, 512], sizes = [8, 256], strides = [1, 1]} : vector<8x1024xf32> to vector<8x256xf32>
    %134 = arith.mulf %121, %133 : vector<8x256xf32>
    %135 = arith.addf %132, %134 : vector<8x256xf32>
    %136 = vector.extract_strided_slice %10 {offsets = [0, 768], sizes = [8, 256], strides = [1, 1]} : vector<8x1024xf32> to vector<8x256xf32>
    %137 = arith.mulf %123, %136 : vector<8x256xf32>
    %138 = arith.addf %135, %137 : vector<8x256xf32>
    %139 = arith.mulf %138, %127 : vector<8x256xf32>
    %140 = arith.addf %83, %139 : vector<8x256xf32>
    %141 = vector.extract_strided_slice %25 {offsets = [0, 512], sizes = [8, 256], strides = [1, 1]} : vector<8x1024xf32> to vector<8x256xf32>
    %142 = vector.extract_strided_slice %22 {offsets = [0, 0], sizes = [8, 256], strides = [1, 1]} : vector<8x1024xf32> to vector<8x256xf32>
    %143 = arith.mulf %141, %142 : vector<8x256xf32>
    %cst_51 = arith.constant dense<0.000000e+00> : vector<8x256xf32>
    %144 = tpu.matmul %1, %143, %cst_51 {dimension_numbers = #tpu.dot_dimension_numbers<[1], [0], [0], [1], [0, 0, 1, 1], [], []>} : vector<8x8xf32>, vector<8x256xf32>, vector<8x256xf32> -> vector<8x256xf32>
    %c2_52 = arith.constant 2 : index
    %c0_53 = arith.constant 0 : index
    %c0_54 = arith.constant 0 : index
    %c0_55 = arith.constant 0 : index
    %145 = vector.load %arg6[%c2_52, %c0_53, %c0_54, %c0_55] : memref<4x4x8x1xf32, #tpu.memory_space<vmem>>, vector<1x1x8x1xf32>
    %146 = vector.shape_cast %145 : vector<1x1x8x1xf32> to vector<8x1xf32>
    %147 = vector.broadcast %146 : vector<8x1xf32> to vector<8x256xf32>
    %148 = arith.addf %144, %147 : vector<8x256xf32>
    %149 = vector.extract_strided_slice %22 {offsets = [0, 256], sizes = [8, 256], strides = [1, 1]} : vector<8x1024xf32> to vector<8x256xf32>
    %150 = arith.mulf %141, %149 : vector<8x256xf32>
    %cst_56 = arith.constant dense<0.000000e+00> : vector<8x256xf32>
    %151 = tpu.matmul %1, %150, %cst_56 {dimension_numbers = #tpu.dot_dimension_numbers<[1], [0], [0], [1], [0, 0, 1, 1], [], []>} : vector<8x8xf32>, vector<8x256xf32>, vector<8x256xf32> -> vector<8x256xf32>
    %c2_57 = arith.constant 2 : index
    %c1_58 = arith.constant 1 : index
    %c0_59 = arith.constant 0 : index
    %c0_60 = arith.constant 0 : index
    %152 = vector.load %arg6[%c2_57, %c1_58, %c0_59, %c0_60] : memref<4x4x8x1xf32, #tpu.memory_space<vmem>>, vector<1x1x8x1xf32>
    %153 = vector.shape_cast %152 : vector<1x1x8x1xf32> to vector<8x1xf32>
    %154 = vector.broadcast %153 : vector<8x1xf32> to vector<8x256xf32>
    %155 = arith.addf %151, %154 : vector<8x256xf32>
    %156 = vector.extract_strided_slice %22 {offsets = [0, 512], sizes = [8, 256], strides = [1, 1]} : vector<8x1024xf32> to vector<8x256xf32>
    %157 = arith.mulf %141, %156 : vector<8x256xf32>
    %cst_61 = arith.constant dense<0.000000e+00> : vector<8x256xf32>
    %158 = tpu.matmul %1, %157, %cst_61 {dimension_numbers = #tpu.dot_dimension_numbers<[1], [0], [0], [1], [0, 0, 1, 1], [], []>} : vector<8x8xf32>, vector<8x256xf32>, vector<8x256xf32> -> vector<8x256xf32>
    %c2_62 = arith.constant 2 : index
    %c2_63 = arith.constant 2 : index
    %c0_64 = arith.constant 0 : index
    %c0_65 = arith.constant 0 : index
    %159 = vector.load %arg6[%c2_62, %c2_63, %c0_64, %c0_65] : memref<4x4x8x1xf32, #tpu.memory_space<vmem>>, vector<1x1x8x1xf32>
    %160 = vector.shape_cast %159 : vector<1x1x8x1xf32> to vector<8x1xf32>
    %161 = vector.broadcast %160 : vector<8x1xf32> to vector<8x256xf32>
    %162 = arith.addf %158, %161 : vector<8x256xf32>
    %163 = vector.extract_strided_slice %22 {offsets = [0, 768], sizes = [8, 256], strides = [1, 1]} : vector<8x1024xf32> to vector<8x256xf32>
    %164 = arith.mulf %141, %163 : vector<8x256xf32>
    %cst_66 = arith.constant dense<0.000000e+00> : vector<8x256xf32>
    %165 = tpu.matmul %1, %164, %cst_66 {dimension_numbers = #tpu.dot_dimension_numbers<[1], [0], [0], [1], [0, 0, 1, 1], [], []>} : vector<8x8xf32>, vector<8x256xf32>, vector<8x256xf32> -> vector<8x256xf32>
    %c2_67 = arith.constant 2 : index
    %c3_68 = arith.constant 3 : index
    %c0_69 = arith.constant 0 : index
    %c0_70 = arith.constant 0 : index
    %166 = vector.load %arg6[%c2_67, %c3_68, %c0_69, %c0_70] : memref<4x4x8x1xf32, #tpu.memory_space<vmem>>, vector<1x1x8x1xf32>
    %167 = vector.shape_cast %166 : vector<1x1x8x1xf32> to vector<8x1xf32>
    %168 = vector.broadcast %167 : vector<8x1xf32> to vector<8x256xf32>
    %169 = arith.addf %165, %168 : vector<8x256xf32>
    %170 = arith.maximumf %148, %155 : vector<8x256xf32>
    %171 = arith.maximumf %170, %162 : vector<8x256xf32>
    %172 = arith.maximumf %171, %169 : vector<8x256xf32>
    %173 = arith.subf %148, %172 : vector<8x256xf32>
    %174 = math.exp %173 : vector<8x256xf32>
    %175 = arith.subf %155, %172 : vector<8x256xf32>
    %176 = math.exp %175 : vector<8x256xf32>
    %177 = arith.subf %162, %172 : vector<8x256xf32>
    %178 = math.exp %177 : vector<8x256xf32>
    %179 = arith.subf %169, %172 : vector<8x256xf32>
    %180 = math.exp %179 : vector<8x256xf32>
    %181 = arith.addf %174, %176 : vector<8x256xf32>
    %182 = arith.addf %181, %178 : vector<8x256xf32>
    %183 = arith.addf %182, %180 : vector<8x256xf32>
    %184 = tpu.reciprocal %183 {approx = true} : vector<8x256xf32> -> vector<8x256xf32>
    %185 = vector.extract_strided_slice %10 {offsets = [0, 0], sizes = [8, 256], strides = [1, 1]} : vector<8x1024xf32> to vector<8x256xf32>
    %186 = arith.mulf %174, %185 : vector<8x256xf32>
    %187 = vector.extract_strided_slice %10 {offsets = [0, 256], sizes = [8, 256], strides = [1, 1]} : vector<8x1024xf32> to vector<8x256xf32>
    %188 = arith.mulf %176, %187 : vector<8x256xf32>
    %189 = arith.addf %186, %188 : vector<8x256xf32>
    %190 = vector.extract_strided_slice %10 {offsets = [0, 512], sizes = [8, 256], strides = [1, 1]} : vector<8x1024xf32> to vector<8x256xf32>
    %191 = arith.mulf %178, %190 : vector<8x256xf32>
    %192 = arith.addf %189, %191 : vector<8x256xf32>
    %193 = vector.extract_strided_slice %10 {offsets = [0, 768], sizes = [8, 256], strides = [1, 1]} : vector<8x1024xf32> to vector<8x256xf32>
    %194 = arith.mulf %180, %193 : vector<8x256xf32>
    %195 = arith.addf %192, %194 : vector<8x256xf32>
    %196 = arith.mulf %195, %184 : vector<8x256xf32>
    %197 = arith.addf %140, %196 : vector<8x256xf32>
    %198 = vector.extract_strided_slice %25 {offsets = [0, 768], sizes = [8, 256], strides = [1, 1]} : vector<8x1024xf32> to vector<8x256xf32>
    %199 = vector.extract_strided_slice %22 {offsets = [0, 0], sizes = [8, 256], strides = [1, 1]} : vector<8x1024xf32> to vector<8x256xf32>
    %200 = arith.mulf %198, %199 : vector<8x256xf32>
    %cst_71 = arith.constant dense<0.000000e+00> : vector<8x256xf32>
    %201 = tpu.matmul %1, %200, %cst_71 {dimension_numbers = #tpu.dot_dimension_numbers<[1], [0], [0], [1], [0, 0, 1, 1], [], []>} : vector<8x8xf32>, vector<8x256xf32>, vector<8x256xf32> -> vector<8x256xf32>
    %c3_72 = arith.constant 3 : index
    %c0_73 = arith.constant 0 : index
    %c0_74 = arith.constant 0 : index
    %c0_75 = arith.constant 0 : index
    %202 = vector.load %arg6[%c3_72, %c0_73, %c0_74, %c0_75] : memref<4x4x8x1xf32, #tpu.memory_space<vmem>>, vector<1x1x8x1xf32>
    %203 = vector.shape_cast %202 : vector<1x1x8x1xf32> to vector<8x1xf32>
    %204 = vector.broadcast %203 : vector<8x1xf32> to vector<8x256xf32>
    %205 = arith.addf %201, %204 : vector<8x256xf32>
    %206 = vector.extract_strided_slice %22 {offsets = [0, 256], sizes = [8, 256], strides = [1, 1]} : vector<8x1024xf32> to vector<8x256xf32>
    %207 = arith.mulf %198, %206 : vector<8x256xf32>
    %cst_76 = arith.constant dense<0.000000e+00> : vector<8x256xf32>
    %208 = tpu.matmul %1, %207, %cst_76 {dimension_numbers = #tpu.dot_dimension_numbers<[1], [0], [0], [1], [0, 0, 1, 1], [], []>} : vector<8x8xf32>, vector<8x256xf32>, vector<8x256xf32> -> vector<8x256xf32>
    %c3_77 = arith.constant 3 : index
    %c1_78 = arith.constant 1 : index
    %c0_79 = arith.constant 0 : index
    %c0_80 = arith.constant 0 : index
    %209 = vector.load %arg6[%c3_77, %c1_78, %c0_79, %c0_80] : memref<4x4x8x1xf32, #tpu.memory_space<vmem>>, vector<1x1x8x1xf32>
    %210 = vector.shape_cast %209 : vector<1x1x8x1xf32> to vector<8x1xf32>
    %211 = vector.broadcast %210 : vector<8x1xf32> to vector<8x256xf32>
    %212 = arith.addf %208, %211 : vector<8x256xf32>
    %213 = vector.extract_strided_slice %22 {offsets = [0, 512], sizes = [8, 256], strides = [1, 1]} : vector<8x1024xf32> to vector<8x256xf32>
    %214 = arith.mulf %198, %213 : vector<8x256xf32>
    %cst_81 = arith.constant dense<0.000000e+00> : vector<8x256xf32>
    %215 = tpu.matmul %1, %214, %cst_81 {dimension_numbers = #tpu.dot_dimension_numbers<[1], [0], [0], [1], [0, 0, 1, 1], [], []>} : vector<8x8xf32>, vector<8x256xf32>, vector<8x256xf32> -> vector<8x256xf32>
    %c3_82 = arith.constant 3 : index
    %c2_83 = arith.constant 2 : index
    %c0_84 = arith.constant 0 : index
    %c0_85 = arith.constant 0 : index
    %216 = vector.load %arg6[%c3_82, %c2_83, %c0_84, %c0_85] : memref<4x4x8x1xf32, #tpu.memory_space<vmem>>, vector<1x1x8x1xf32>
    %217 = vector.shape_cast %216 : vector<1x1x8x1xf32> to vector<8x1xf32>
    %218 = vector.broadcast %217 : vector<8x1xf32> to vector<8x256xf32>
    %219 = arith.addf %215, %218 : vector<8x256xf32>
    %220 = vector.extract_strided_slice %22 {offsets = [0, 768], sizes = [8, 256], strides = [1, 1]} : vector<8x1024xf32> to vector<8x256xf32>
    %221 = arith.mulf %198, %220 : vector<8x256xf32>
    %cst_86 = arith.constant dense<0.000000e+00> : vector<8x256xf32>
    %222 = tpu.matmul %1, %221, %cst_86 {dimension_numbers = #tpu.dot_dimension_numbers<[1], [0], [0], [1], [0, 0, 1, 1], [], []>} : vector<8x8xf32>, vector<8x256xf32>, vector<8x256xf32> -> vector<8x256xf32>
    %c3_87 = arith.constant 3 : index
    %c3_88 = arith.constant 3 : index
    %c0_89 = arith.constant 0 : index
    %c0_90 = arith.constant 0 : index
    %223 = vector.load %arg6[%c3_87, %c3_88, %c0_89, %c0_90] : memref<4x4x8x1xf32, #tpu.memory_space<vmem>>, vector<1x1x8x1xf32>
    %224 = vector.shape_cast %223 : vector<1x1x8x1xf32> to vector<8x1xf32>
    %225 = vector.broadcast %224 : vector<8x1xf32> to vector<8x256xf32>
    %226 = arith.addf %222, %225 : vector<8x256xf32>
    %227 = arith.maximumf %205, %212 : vector<8x256xf32>
    %228 = arith.maximumf %227, %219 : vector<8x256xf32>
    %229 = arith.maximumf %228, %226 : vector<8x256xf32>
    %230 = arith.subf %205, %229 : vector<8x256xf32>
    %231 = math.exp %230 : vector<8x256xf32>
    %232 = arith.subf %212, %229 : vector<8x256xf32>
    %233 = math.exp %232 : vector<8x256xf32>
    %234 = arith.subf %219, %229 : vector<8x256xf32>
    %235 = math.exp %234 : vector<8x256xf32>
    %236 = arith.subf %226, %229 : vector<8x256xf32>
    %237 = math.exp %236 : vector<8x256xf32>
    %238 = arith.addf %231, %233 : vector<8x256xf32>
    %239 = arith.addf %238, %235 : vector<8x256xf32>
    %240 = arith.addf %239, %237 : vector<8x256xf32>
    %241 = tpu.reciprocal %240 {approx = true} : vector<8x256xf32> -> vector<8x256xf32>
    %242 = vector.extract_strided_slice %10 {offsets = [0, 0], sizes = [8, 256], strides = [1, 1]} : vector<8x1024xf32> to vector<8x256xf32>
    %243 = arith.mulf %231, %242 : vector<8x256xf32>
    %244 = vector.extract_strided_slice %10 {offsets = [0, 256], sizes = [8, 256], strides = [1, 1]} : vector<8x1024xf32> to vector<8x256xf32>
    %245 = arith.mulf %233, %244 : vector<8x256xf32>
    %246 = arith.addf %243, %245 : vector<8x256xf32>
    %247 = vector.extract_strided_slice %10 {offsets = [0, 512], sizes = [8, 256], strides = [1, 1]} : vector<8x1024xf32> to vector<8x256xf32>
    %248 = arith.mulf %235, %247 : vector<8x256xf32>
    %249 = arith.addf %246, %248 : vector<8x256xf32>
    %250 = vector.extract_strided_slice %10 {offsets = [0, 768], sizes = [8, 256], strides = [1, 1]} : vector<8x1024xf32> to vector<8x256xf32>
    %251 = arith.mulf %237, %250 : vector<8x256xf32>
    %252 = arith.addf %249, %251 : vector<8x256xf32>
    %253 = arith.mulf %252, %241 : vector<8x256xf32>
    %254 = arith.addf %197, %253 : vector<8x256xf32>
    %cst_91 = arith.constant 2.500000e-01 : f32
    %255 = vector.broadcast %cst_91 : f32 to vector<8x256xf32>
    %256 = arith.mulf %254, %255 : vector<8x256xf32>
    %c0_92 = arith.constant 0 : index
    %c0_93 = arith.constant 0 : index
    %257 = vector.load %arg7[%c0_92, %c0_93] : memref<8x8xf32, #tpu.memory_space<vmem>>, vector<8x8xf32>
    %258 = arith.truncf %257 : vector<8x8xf32> to vector<8x8xbf16>
    %259 = arith.truncf %256 : vector<8x256xf32> to vector<8x256xbf16>
    %cst_94 = arith.constant dense<0.000000e+00> : vector<8x256xf32>
    %260 = tpu.matmul %258, %259, %cst_94 {dimension_numbers = #tpu.dot_dimension_numbers<[1], [0], [0], [1], [0, 0, 1, 1], [], []>} : vector<8x8xbf16>, vector<8x256xbf16>, vector<8x256xf32> -> vector<8x256xf32>
    %c0_95 = arith.constant 0 : index
    %c0_96 = arith.constant 0 : index
    %261 = vector.load %arg8[%c0_95, %c0_96] : memref<8x1xf32, #tpu.memory_space<vmem>>, vector<8x1xf32>
    %262 = vector.broadcast %261 : vector<8x1xf32> to vector<8x256xf32>
    %263 = arith.addf %260, %262 : vector<8x256xf32>
    %c0_97 = arith.constant 0 : index
    %c0_98 = arith.constant 0 : index
    %264 = vector.load %arg9[%c0_97, %c0_98] : memref<16x8xf32, #tpu.memory_space<vmem>>, vector<16x8xf32>
    %265 = vector.extract_strided_slice %263 {offsets = [0, 0], sizes = [8, 128], strides = [1, 1]} : vector<8x256xf32> to vector<8x128xf32>
    %266 = arith.truncf %264 : vector<16x8xf32> to vector<16x8xbf16>
    %267 = arith.truncf %265 : vector<8x128xf32> to vector<8x128xbf16>
    %cst_99 = arith.constant dense<0.000000e+00> : vector<16x128xf32>
    %268 = tpu.matmul %266, %267, %cst_99 {dimension_numbers = #tpu.dot_dimension_numbers<[1], [0], [0], [1], [0, 0, 1, 1], [], []>} : vector<16x8xbf16>, vector<8x128xbf16>, vector<16x128xf32> -> vector<16x128xf32>
    %c0_100 = arith.constant 0 : index
    %c0_101 = arith.constant 0 : index
    %269 = vector.load %arg10[%c0_100, %c0_101] : memref<16x8xf32, #tpu.memory_space<vmem>>, vector<16x8xf32>
    %270 = vector.extract_strided_slice %263 {offsets = [0, 128], sizes = [8, 128], strides = [1, 1]} : vector<8x256xf32> to vector<8x128xf32>
    %271 = arith.truncf %269 : vector<16x8xf32> to vector<16x8xbf16>
    %272 = arith.truncf %270 : vector<8x128xf32> to vector<8x128xbf16>
    %cst_102 = arith.constant dense<0.000000e+00> : vector<16x128xf32>
    %273 = tpu.matmul %271, %272, %cst_102 {dimension_numbers = #tpu.dot_dimension_numbers<[1], [0], [0], [1], [0, 0, 1, 1], [], []>} : vector<16x8xbf16>, vector<8x128xbf16>, vector<16x128xf32> -> vector<16x128xf32>
    %274 = arith.addf %268, %273 : vector<16x128xf32>
    %c0_103 = arith.constant 0 : index
    %c0_104 = arith.constant 0 : index
    %275 = vector.load %arg11[%c0_103, %c0_104] : memref<16x1xf32, #tpu.memory_space<vmem>>, vector<16x1xf32>
    %276 = vector.broadcast %275 : vector<16x1xf32> to vector<16x128xf32>
    %277 = arith.addf %274, %276 : vector<16x128xf32>
    %c0_105 = arith.constant 0 : index
    %c0_106 = arith.constant 0 : index
    %278 = vector.load %arg12[%c0_105, %c0_106] : memref<16x128xf32, #tpu.memory_space<vmem>>, vector<16x128xf32>
    tpu.vector_store %arg12[%c0_105, %c0_106], %277 {strides = array<i32>} : memref<16x128xf32, #tpu.memory_space<vmem>>, vector<16x128xf32>,
    return
  }
  func.func @transform_0(%arg0: i32) -> (i32, i32) {
    %c0_i32 = arith.constant 0 : i32
    %c0_i32_0 = arith.constant 0 : i32
    return %c0_i32, %arg0 : i32, i32
  }
  func.func @transform_1(%arg0: i32) -> (i32, i32) {
    %c0_i32 = arith.constant 0 : i32
    %c0_i32_0 = arith.constant 0 : i32
    %c0_i32_1 = arith.constant 0 : i32
    return %c0_i32, %c0_i32_0 : i32, i32
  }
  func.func @transform_2(%arg0: i32) -> (i32, i32) {
    %c0_i32 = arith.constant 0 : i32
    %c0_i32_0 = arith.constant 0 : i32
    %c0_i32_1 = arith.constant 0 : i32
    return %c0_i32, %c0_i32_0 : i32, i32
  }
  func.func @transform_3(%arg0: i32) -> (i32, i32) {
    %c0_i32 = arith.constant 0 : i32
    %c0_i32_0 = arith.constant 0 : i32
    %c0_i32_1 = arith.constant 0 : i32
    return %c0_i32, %c0_i32_0 : i32, i32
  }
  func.func @transform_4(%arg0: i32) -> (i32, i32) {
    %c0_i32 = arith.constant 0 : i32
    %c0_i32_0 = arith.constant 0 : i32
    %c0_i32_1 = arith.constant 0 : i32
    return %c0_i32, %c0_i32_0 : i32, i32
  }
  func.func @transform_5(%arg0: i32) -> (i32, i32, i32, i32) {
    %c0_i32 = arith.constant 0 : i32
    %c0_i32_0 = arith.constant 0 : i32
    %c0_i32_1 = arith.constant 0 : i32
    %c0_i32_2 = arith.constant 0 : i32
    %c0_i32_3 = arith.constant 0 : i32
    return %c0_i32, %c0_i32_0, %c0_i32_1, %c0_i32_2 : i32, i32, i32, i32
  }
  func.func @transform_6(%arg0: i32) -> (i32, i32) {
    %c0_i32 = arith.constant 0 : i32
    %c0_i32_0 = arith.constant 0 : i32
    %c0_i32_1 = arith.constant 0 : i32
    return %c0_i32, %c0_i32_0 : i32, i32
  }
  func.func @transform_7(%arg0: i32) -> (i32, i32) {
    %c0_i32 = arith.constant 0 : i32
    %c0_i32_0 = arith.constant 0 : i32
    %c0_i32_1 = arith.constant 0 : i32
    return %c0_i32, %c0_i32_0 : i32, i32
  }
  func.func @transform_8(%arg0: i32) -> (i32, i32) {
    %c0_i32 = arith.constant 0 : i32
    %c0_i32_0 = arith.constant 0 : i32
    %c0_i32_1 = arith.constant 0 : i32
    return %c0_i32, %c0_i32_0 : i32, i32
  }
  func.func @transform_9(%arg0: i32) -> (i32, i32) {
    %c0_i32 = arith.constant 0 : i32
    %c0_i32_0 = arith.constant 0 : i32
    %c0_i32_1 = arith.constant 0 : i32
    return %c0_i32, %c0_i32_0 : i32, i32
  }
  func.func @transform_10(%arg0: i32) -> (i32, i32) {
    %c0_i32 = arith.constant 0 : i32
    %c0_i32_0 = arith.constant 0 : i32
    %c0_i32_1 = arith.constant 0 : i32
    return %c0_i32, %c0_i32_0 : i32, i32
  }
  func.func @transform_11(%arg0: i32) -> (i32, i32) {
    %c0_i32 = arith.constant 0 : i32
    %c0_i32_0 = arith.constant 0 : i32
    return %c0_i32, %arg0 : i32, i32
  }
}

</mosaic_0001>

<bundles_post_ra>
// kernel: _lambda_.2
= control target key start
LH: loop header
LB: loop body
LE: loop exit
PB: predicated region body
PF: predicated region fallthrough
CT: control target
= control target key end

     0   :  { %v441_v0 = vmov 0   ;;  %s660_s1 = inlined_call_operand.vmem [shape: f32[32,8,1], index: 1, kind: input, shape index: {}]   ;;  %s661_s2 = inlined_call_operand.vmem [shape: f32[8,1], index: 2, kind: input, shape index: {}]   ;;  %s662_s0 = inlined_call_operand.vmem [shape: f32[32,8,128], index: 0, kind: input, shape index: {}]   ;;  %s663_s3 = inlined_call_operand.vmem [shape: f32[8,128], index: 3, kind: output, shape index: {}]  }
   0x1   :  { %440 = vset.pattern.permute.xlu2 %v441_v0  ;;  %439 = vset.pattern.permute.xlu1 %v441_v0  ;;  %v382_v1 = vld [vmem:[%s660_s1 + $0x20] sm:$0xff]  ;;  %v378_v2 = vld [vmem:[%s660_s1 + $0x10] sm:$0xff]  ;;  %v384_v4 = vld [vmem:[%s660_s1 + $0x28] sm:$0xff] }
   0x2   :  { %v15_v3 = vld [vmem:[%s660_s1] sm:$0xff]  ;;  %438 = vset.pattern.permute.xlu0 %v441_v0  ;;  %61 = vperm.xlu2 %440, %v382_v1   ;;  %v380_v5 = vld [vmem:[%s660_s1 + $0x18] sm:$0xff]  ;;  %v376_v6 = vld [vmem:[%s660_s1 + $0x8] sm:$0xff] }
   0x3   :  { %39 = vperm.xlu1 %439, %v378_v2   ;;  %18 = vperm.xlu0 %438, %v15_v3   ;;  %v390_v7 = vld [vmem:[%s660_s1 + $0x40] sm:$0xff]  ;;  %v388_v8 = vld [vmem:[%s660_s1 + $0x38] sm:$0xff]  ;;  %v386_v9 = vld [vmem:[%s660_s1 + $0x30] sm:$0xff] }
   0x4   :  { %v396_v10 = vld [vmem:[%s660_s1 + $0x58] sm:$0xff]  ;;  %v394_v11 = vld [vmem:[%s660_s1 + $0x50] sm:$0xff]  ;;  %v392_v12 = vld [vmem:[%s660_s1 + $0x48] sm:$0xff] }
   0x5   :  { %v402_v13 = vld [vmem:[%s660_s1 + $0x70] sm:$0xff]  ;;  %v400_v14 = vld [vmem:[%s660_s1 + $0x68] sm:$0xff]  ;;  %v398_v15 = vld [vmem:[%s660_s1 + $0x60] sm:$0xff] }
   0x6   :  { %v408_v16 = vld [vmem:[%s660_s1 + $0x88] sm:$0xff]  ;;  %v406_v17 = vld [vmem:[%s660_s1 + $0x80] sm:$0xff]  ;;  %v404_v18 = vld [vmem:[%s660_s1 + $0x78] sm:$0xff] }
   0x7   :  { %v414_v19 = vld [vmem:[%s660_s1 + $0xa0] sm:$0xff]  ;;  %v412_v20 = vld [vmem:[%s660_s1 + $0x98] sm:$0xff]  ;;  %v410_v21 = vld [vmem:[%s660_s1 + $0x90] sm:$0xff] }
   0x8   :  { %v420_v22 = vld [vmem:[%s660_s1 + $0xb8] sm:$0xff]  ;;  %v418_v23 = vld [vmem:[%s660_s1 + $0xb0] sm:$0xff]  ;;  %v416_v24 = vld [vmem:[%s660_s1 + $0xa8] sm:$0xff] }
   0x9   :  { %v426_v25 = vld [vmem:[%s660_s1 + $0xd0] sm:$0xff]  ;;  %v424_v26 = vld [vmem:[%s660_s1 + $0xc8] sm:$0xff]  ;;  %v422_v27 = vld [vmem:[%s660_s1 + $0xc0] sm:$0xff] }
   0xa   :  { %72 = vperm.xlu2 %440, %v384_v4   ;;  %v432_v28 = vld [vmem:[%s660_s1 + $0xe8] sm:$0xff]  ;;  %v430_v29 = vld [vmem:[%s660_s1 + $0xe0] sm:$0xff]  ;;  %v428_v30 = vld [vmem:[%s660_s1 + $0xd8] sm:$0xff] }
   0xb   :  { %50 = vperm.xlu1 %439, %v380_v5   ;;  %28 = vperm.xlu0 %438, %v376_v6   ;;  %v363_v31 = vld [vmem:[%s661_s2] sm:$0xff]  ;;  %v436_v32 = vld [vmem:[%s660_s1 + $0xf8] sm:$0xff]  ;;  %v434_v33 = vld [vmem:[%s660_s1 + $0xf0] sm:$0xff] }
   0xc   :  { %v14_v39 = vld [vmem:[%s662_s0] sm:$0xff]  ;;  %v375_v40 = vld [vmem:[%s662_s0 + $0x8] sm:$0xff]  ;;  %v377_v41 = vld [vmem:[%s662_s0 + $0x10] sm:$0xff] }
   0xd   :  { %v379_v46 = vld [vmem:[%s662_s0 + $0x18] sm:$0xff]  ;;  %v381_v49 = vld [vmem:[%s662_s0 + $0x20] sm:$0xff]  ;;  %v383_v52 = vld [vmem:[%s662_s0 + $0x28] sm:$0xff] }
   0xe   :  { %v385_v58 = vld [vmem:[%s662_s0 + $0x30] sm:$0xff]  ;;  %v387_v61 = vld [vmem:[%s662_s0 + $0x38] sm:$0xff]  ;;  %v389_v0 = vld [vmem:[%s662_s0 + $0x40] sm:$0xff] }
   0xf   :  { %v391_v3 = vld [vmem:[%s662_s0 + $0x48] sm:$0xff] }
  0x12   :  { %105 = vperm.xlu2 %440, %v390_v7   ;;  %v393_v7 = vld [vmem:[%s662_s0 + $0x50] sm:$0xff] }
  0x13   :  { %94 = vperm.xlu1 %439, %v388_v8   ;;  %83 = vperm.xlu0 %438, %v386_v9  }
  0x1a   :  { %138 = vperm.xlu2 %440, %v396_v10  }
  0x1b   :  { %127 = vperm.xlu1 %439, %v394_v11   ;;  %116 = vperm.xlu0 %438, %v392_v12  }
  0x22   :  { %171 = vperm.xlu2 %440, %v402_v13  }
  0x23   :  { %160 = vperm.xlu1 %439, %v400_v14   ;;  %149 = vperm.xlu0 %438, %v398_v15   ;;  %v395_v14 = vld [vmem:[%s662_s0 + $0x58] sm:$0xff] }
  0x2a   :  { %204 = vperm.xlu2 %440, %v408_v16   ;;  %v397_v16 = vld [vmem:[%s662_s0 + $0x60] sm:$0xff] }
  0x2b   :  { %193 = vperm.xlu1 %439, %v406_v17   ;;  %182 = vperm.xlu0 %438, %v404_v18  }
  0x32   :  { %237 = vperm.xlu2 %440, %v414_v19   ;;  %v399_v19 = vld [vmem:[%s662_s0 + $0x68] sm:$0xff] }
  0x33   :  { %226 = vperm.xlu1 %439, %v412_v20   ;;  %215 = vperm.xlu0 %438, %v410_v21  }
  0x3a   :  { %270 = vperm.xlu2 %440, %v420_v22  }
  0x3b   :  { %259 = vperm.xlu1 %439, %v418_v23   ;;  %248 = vperm.xlu0 %438, %v416_v24  }
  0x42   :  { %303 = vperm.xlu2 %440, %v426_v25  }
  0x43   :  { %292 = vperm.xlu1 %439, %v424_v26   ;;  %281 = vperm.xlu0 %438, %v422_v27   ;;  %v401_v26 = vld [vmem:[%s662_s0 + $0x70] sm:$0xff] }
  0x4a   :  { %336 = vperm.xlu2 %440, %v432_v28   ;;  %v403_v28 = vld [vmem:[%s662_s0 + $0x78] sm:$0xff] }
  0x4b   :  { %325 = vperm.xlu1 %439, %v430_v29   ;;  %314 = vperm.xlu0 %438, %v428_v30  }
  0x52   :  { %366 = vperm.xlu2 %440, %v363_v31   ;;  %v405_v31 = vld [vmem:[%s662_s0 + $0x80] sm:$0xff] }
  0x53   :  { %358 = vperm.xlu1 %439, %v436_v32   ;;  %347 = vperm.xlu0 %438, %v434_v33  }
  0x5c   :  { %v62_v34 = vpop.permute.xlu2 %61 }
  0x5d   :  { %v64_v53 = vmul.f32 %v381_v49, %v62_v34  ;;  %v413_v49 = vld [vmem:[%s662_s0 + $0xa0] sm:$0xff] }
  0x64   :  { %v73_v35 = vpop.permute.xlu2 %72 }
  0x65   :  { %v75_v59 = vmul.f32 %v383_v52, %v73_v35 }
  0x6c   :  { %v106_v38 = vpop.permute.xlu2 %105 }
  0x6d   :  { %v108_v4 = vmul.f32 %v389_v0, %v106_v38 }
  0x74   :  { %v139_v54 = vpop.permute.xlu2 %138 }
  0x75   :  { %v40_v36 = vpop.permute.xlu1 %39  ;;  %v19_v37 = vpop.permute.xlu0 %18  ;;  %v141_v17 = vmul.f32 %v395_v14, %v139_v54  ;;  %v429_v14 = vld [vmem:[%s662_s0 + $0xe0] sm:$0xff] }
  0x76   :  { %v21_v44 = vmul.f32 %v19_v37, %v14_v39  ;;  %v42_v47 = vmul.f32 %v377_v41, %v40_v36  ;;  %v407_v37 = vld [vmem:[%s662_s0 + $0x88] sm:$0xff] }
  0x7c   :  { %v172_v9 = vpop.permute.xlu2 %171 }
  0x7d   :  { %v51_v42 = vpop.permute.xlu1 %50  ;;  %v29_v43 = vpop.permute.xlu0 %28  ;;  %v174_v29 = vmul.f32 %v401_v26, %v172_v9  ;;  %v425_v9 = vld [vmem:[%s662_s0 + $0xd0] sm:$0xff]  ;;  %v435_v26 = vld [vmem:[%s662_s0 + $0xf8] sm:$0xff] }
  0x7e   :  { %v31_v45 = vmul.f32 %v375_v40, %v29_v43  ;;  %v53_v50 = vmul.f32 %v379_v46, %v51_v42  ;;  %v409_v40 = vld [vmem:[%s662_s0 + $0x90] sm:$0xff]  ;;  %v411_v43 = vld [vmem:[%s662_s0 + $0x98] sm:$0xff] }
  0x80   :  { %v32_v48 = vadd.f32 %v31_v45, %v21_v44 }
  0x82   :  { %v43_v51 = vadd.f32 %v42_v47, %v32_v48 }
  0x84   :  { %v54_v55 = vadd.f32 %v53_v50, %v43_v51  ;;  %v205_v23 = vpop.permute.xlu2 %204  ;;  %v415_v51 = vld [vmem:[%s662_s0 + $0xa8] sm:$0xff] }
  0x85   :  { %v95_v56 = vpop.permute.xlu1 %94  ;;  %v84_v57 = vpop.permute.xlu0 %83  ;;  %v207_v41 = vmul.f32 %v407_v37, %v205_v23  ;;  %v433_v23 = vld [vmem:[%s662_s0 + $0xf0] sm:$0xff] }
  0x86   :  { %v65_v60 = vadd.f32 %v64_v53, %v54_v55  ;;  %v86_v63 = vmul.f32 %v385_v58, %v84_v57  ;;  %v97_v1 = vmul.f32 %v387_v61, %v95_v56  ;;  %v417_v55 = vld [vmem:[%s662_s0 + $0xb0] sm:$0xff]  ;;  %v419_v61 = vld [vmem:[%s662_s0 + $0xb8] sm:$0xff] }
  0x88   :  { %v76_v62 = vadd.f32 %v75_v59, %v65_v60 }
  0x8a   :  { %v87_v2 = vadd.f32 %v86_v63, %v76_v62  ;;  %v421_v63 = vld [vmem:[%s662_s0 + $0xc0] sm:$0xff] }
  0x8c   :  { %v98_v5 = vadd.f32 %v97_v1, %v87_v2  ;;  %v238_v38 = vpop.permute.xlu2 %237  ;;  %v423_v2 = vld [vmem:[%s662_s0 + $0xc8] sm:$0xff] }
  0x8d   :  { %v128_v6 = vpop.permute.xlu1 %127  ;;  %v117_v8 = vpop.permute.xlu0 %116  ;;  %v240_v52 = vmul.f32 %v413_v49, %v238_v38 }
  0x8e   :  { %v109_v10 = vadd.f32 %v108_v4, %v98_v5  ;;  %v119_v11 = vmul.f32 %v391_v3, %v117_v8  ;;  %v130_v12 = vmul.f32 %v393_v7, %v128_v6 }
  0x90   :  { %v120_v13 = vadd.f32 %v119_v11, %v109_v10  ;;  %v427_v11 = vld [vmem:[%s662_s0 + $0xd8] sm:$0xff] }
  0x92   :  { %v131_v15 = vadd.f32 %v130_v12, %v120_v13 }
  0x94   :  { %v142_v21 = vadd.f32 %v141_v17, %v131_v15  ;;  %v271_v53 = vpop.permute.xlu2 %270 }
  0x95   :  { %v161_v18 = vpop.permute.xlu1 %160  ;;  %v150_v20 = vpop.permute.xlu0 %149  ;;  %v273_v0 = vmul.f32 %v419_v61, %v271_v53 }
  0x96   :  { %v152_v22 = vmul.f32 %v397_v16, %v150_v20  ;;  %v163_v24 = vmul.f32 %v399_v19, %v161_v18 }
  0x98   :  { %v153_v25 = vadd.f32 %v152_v22, %v142_v21  ;;  %v431_v21 = vld [vmem:[%s662_s0 + $0xe8] sm:$0xff] }
  0x9a   :  { %v164_v27 = vadd.f32 %v163_v24, %v153_v25 }
  0x9c   :  { %v175_v33 = vadd.f32 %v174_v29, %v164_v27  ;;  %v304_v6 = vpop.permute.xlu2 %303 }
  0x9d   :  { %v194_v30 = vpop.permute.xlu1 %193  ;;  %v183_v32 = vpop.permute.xlu0 %182  ;;  %v306_v12 = vmul.f32 %v425_v9, %v304_v6 }
  0x9e   :  { %v185_v34 = vmul.f32 %v403_v28, %v183_v32  ;;  %v196_v35 = vmul.f32 %v405_v31, %v194_v30 }
  0xa0   :  { %v186_v36 = vadd.f32 %v185_v34, %v175_v33 }
  0xa2   :  { %v197_v39 = vadd.f32 %v196_v35, %v186_v36 }
  0xa4   :  { %v208_v45 = vadd.f32 %v207_v41, %v197_v39  ;;  %v337_v20 = vpop.permute.xlu2 %336 }
  0xa5   :  { %v227_v42 = vpop.permute.xlu1 %226  ;;  %v216_v44 = vpop.permute.xlu0 %215  ;;  %v339_v24 = vmul.f32 %v431_v21, %v337_v20 }
  0xa6   :  { %v218_v46 = vmul.f32 %v409_v40, %v216_v44  ;;  %v229_v47 = vmul.f32 %v411_v43, %v227_v42 }
  0xa8   :  { %v219_v48 = vadd.f32 %v218_v46, %v208_v45 }
  0xaa   :  { %v230_v50 = vadd.f32 %v229_v47, %v219_v48 }
  0xac   :  { %v241_v57 = vadd.f32 %v240_v52, %v230_v50  ;;  %v367_v33 = vpop.permute.xlu2 %366 }
  0xad   :  { %v260_v54 = vpop.permute.xlu1 %259  ;;  %v249_v56 = vpop.permute.xlu0 %248 }
  0xae   :  { %v251_v58 = vmul.f32 %v415_v51, %v249_v56  ;;  %v262_v59 = vmul.f32 %v417_v55, %v260_v54 }
  0xb0   :  { %v252_v60 = vadd.f32 %v251_v58, %v241_v57 }
  0xb2   :  { %v263_v62 = vadd.f32 %v262_v59, %v252_v60 }
  0xb4   :  { %v274_v4 = vadd.f32 %v273_v0, %v263_v62 }
  0xb5   :  { %v293_v1 = vpop.permute.xlu1 %292  ;;  %v282_v3 = vpop.permute.xlu0 %281 }
  0xb6   :  { %v284_v5 = vmul.f32 %v421_v63, %v282_v3  ;;  %v295_v7 = vmul.f32 %v423_v2, %v293_v1 }
  0xb8   :  { %v285_v8 = vadd.f32 %v284_v5, %v274_v4 }
  0xba   :  { %v296_v10 = vadd.f32 %v295_v7, %v285_v8 }
  0xbc   :  { %v307_v16 = vadd.f32 %v306_v12, %v296_v10 }
  0xbd   :  { %v326_v13 = vpop.permute.xlu1 %325  ;;  %v315_v15 = vpop.permute.xlu0 %314 }
  0xbe   :  { %v317_v17 = vmul.f32 %v427_v11, %v315_v15  ;;  %v328_v18 = vmul.f32 %v429_v14, %v326_v13 }
  0xc0   :  { %v318_v19 = vadd.f32 %v317_v17, %v307_v16 }
  0xc2   :  { %v329_v22 = vadd.f32 %v328_v18, %v318_v19 }
  0xc4   :  { %v340_v28 = vadd.f32 %v339_v24, %v329_v22 }
  0xc5   :  { %v359_v25 = vpop.permute.xlu1 %358  ;;  %v348_v27 = vpop.permute.xlu0 %347 }
  0xc6   :  { %v350_v29 = vmul.f32 %v433_v23, %v348_v27  ;;  %v361_v30 = vmul.f32 %v435_v26, %v359_v25 }
  0xc8   :  { %v351_v31 = vadd.f32 %v350_v29, %v340_v28 }
  0xca   :  { %v362_v32 = vadd.f32 %v361_v30, %v351_v31 }
  0xcc   :  { %v369_v34 = vadd.f32 %v367_v33, %v362_v32 }
  0xce   :  { %370 = vst [vmem:[%s663_s3] sm:$0xff] %v369_v34 }

// kernel: _lambda_.3
= control target key start
LH: loop header
LB: loop body
LE: loop exit
PB: predicated region body
PF: predicated region fallthrough
CT: control target
= control target key end

     0   :  { %v2129_v0 = vmov 0   ;;  %vm94_vm0 = vcmask 1043456   ;;  %vm87_vm1 = vcmask 64512   ;;  %s3029_s4 = inlined_call_operand.vmem [shape: f32[8,1], index: 4, kind: input, shape index: {}]   ;;  %s3030_s2 = inlined_call_operand.vmem [shape: f32[24,1], index: 2, kind: input, shape index: {}]   ;;  %s3031_s0 = inlined_call_operand.vmem [shape: bf16[8,1024], index: 0, kind: input, shape index: {}]   ;;  %s3032_s1 = inlined_call_operand.vmem [shape: f32[24,8], index: 1, kind: input, shape index: {}]   ;;  %s3033_s5 = inlined_call_operand.vmem [shape: f32[4,4,8,1], index: 5, kind: input, shape index: {}]   ;;  %s3034_s10 = inlined_call_operand.vmem [shape: f32[16,1], index: 10, kind: input, shape index: {}]   ;;  %s3035_s3 = inlined_call_operand.vmem [shape: f32[8,8], index: 3, kind: input, shape index: {}]   ;;  %s3036_s7 = inlined_call_operand.vmem [shape: f32[8,1], index: 7, kind: input, shape index: {}]   ;;  %s3037_s6 = inlined_call_operand.vmem [shape: f32[8,8], index: 6, kind: input, shape index: {}]   ;;  %s3038_s8 = inlined_call_operand.vmem [shape: f32[16,8], index: 8, kind: input, shape index: {}]   ;;  %s3039_s9 = inlined_call_operand.vmem [shape: f32[16,8], index: 9, kind: input, shape index: {}]   ;;  %s3040_s11 = inlined_call_operand.vmem [shape: f32[16,128], index: 11, kind: output, shape index: {}]  }
   0x1   :  { %2015 = vset.pattern.permute.xlu1 %v2129_v0  ;;  %2014 = vset.pattern.permute.xlu0 %v2129_v0  ;;  %v794_v1 = vld [vmem:[%s3029_s4] sm:$0xff]  ;;  %v40_v6 = vld [vmem:[%s3031_s0 + $0x8] sm:$0xff]  ;;  %v42_v11 = vld [vmem:[%s3031_s0 + $0x18] sm:$0xff] }
   0x2   :  { %v49_v2 = vld [vmem:[%s3030_s2] sm:$0xff]  ;;  %797 = vperm.xlu1 %2015, %v794_v1   ;;  %v73_v7 = vunpack.c.l.b16 %v40_v6  ;;  %v74_v8 = vunpack.c.h.b16 %v40_v6  ;;  %v45_v10 = vld [vmem:[%s3032_s1 + $0x8] sm:$0xff]  ;;  %2016 = vset.pattern.permute.xlu2 %v2129_v0  ;;  %v77_v14 = vunpack.c.l.b16 %v42_v11  ;;  %v78_v17 = vunpack.c.h.b16 %v42_v11  ;;  %v41_v18 = vld [vmem:[%s3031_s0 + $0x10] sm:$0xff] }
   0x3   :  { %v39_v3 = vld [vmem:[%s3031_s0] sm:$0xff]  ;;  %54 = vperm.xlu0 %2014, %v49_v2   ;;  %v50_v26 = vld [vmem:[%s3030_s2 + $0x8] sm:$0xff]  ;;  %v75_v28 = vunpack.c.l.b16 %v41_v18  ;;  %v76_v30 = vunpack.c.h.b16 %v41_v18  ;;  %v1967_v36 = vld [vmem:[%s3033_s5 + $0x10] sm:$0xff] }
   0x4   :  { %v71_v4 = vunpack.c.l.b16 %v39_v3  ;;  %v72_v5 = vunpack.c.h.b16 %v39_v3  ;;  %v44_v9 = vld [vmem:[%s3032_s1] sm:$0xff]  ;;  %v81_v15 = vpack.c.b16 %v73_v7, %v73_v7  ;;  %v82_v16 = vpack.c.b16 %v74_v8, %v74_v8  ;;  %v1976_v37 = vld [vmem:[%s3033_s5 + $0x28] sm:$0xff]  ;;  %v46_v38 = vld [vmem:[%s3032_s1 + $0x10] sm:$0xff] }
   0x5   :  { %v47_v21 = vpack.c.bf16 %v45_v10, %v44_v9  ;;  %v85_v22 = vpack.c.b16 %v77_v14, %v77_v14  ;;  %v810_v25 = vld [vmem:[%s3033_s5] sm:$0xff]  ;;  %v86_v27 = vpack.c.b16 %v78_v17, %v78_v17  ;;  %v83_v31 = vpack.c.b16 %v75_v28, %v75_v28  ;;  %v1988_v39 = vld [vmem:[%s3033_s5 + $0x48] sm:$0xff]  ;;  %v1991_v42 = vld [vmem:[%s3033_s5 + $0x50] sm:$0xff] }
   0x6   :  { %v79_v12 = vpack.c.b16 %v71_v4, %v71_v4  ;;  %v80_v13 = vpack.c.b16 %v72_v5, %v72_v5  ;;  %v102_v23 = vsel %vm94_vm0, %v81_v15, 0  ;;  %v105_v24 = vsel %vm94_vm0, %v82_v16, 0  ;;  %v1985_v40 = vld [vmem:[%s3033_s5 + $0x40] sm:$0xff]  ;;  %v1982_v43 = vld [vmem:[%s3033_s5 + $0x38] sm:$0xff]  ;;  %v2000_v45 = vld [vmem:[%s3033_s5 + $0x68] sm:$0xff] }
   0x7   :  { %162 = vmatpush.bf16.msra.mxu2 %v102_v23  ;;  %180 = vmatpush.bf16.msra.mxu3 %v105_v24  ;;  %v114_v29 = vsel %vm94_vm0, %v85_v22, 0  ;;  %v117_v32 = vsel %vm94_vm0, %v86_v27, 0  ;;  %v84_v33 = vpack.c.b16 %v76_v30, %v76_v30  ;;  %v108_v34 = vsel %vm94_vm0, %v83_v31, 0  ;;  %v1994_v44 = vld [vmem:[%s3033_s5 + $0x58] sm:$0xff]  ;;  %v51_v46 = vld [vmem:[%s3030_s2 + $0x10] sm:$0xff]  ;;  %v1910_v48 = vld [vmem:[%s3034_s10] sm:$0xff] }
   0x8   :  { %v96_v19 = vsel %vm94_vm0, %v79_v12, 0  ;;  %v99_v20 = vsel %vm94_vm0, %v80_v13, 0  ;;  %v48_v41 = vpack.c.bf16 %v46_v38, %v46_v38  ;;  %v2006_v47 = vld [vmem:[%s3033_s5 + $0x78] sm:$0xff]  ;;  %v2291_v56 = vld [vmem:[%s3035_s3] sm:$0xff]  ;;  %v1911_v9 = vld [vmem:[%s3034_s10 + $0x8] sm:$0xff] }
   0x9   :  { %126 = vmatpush.bf16.msra.mxu0 %v96_v19  ;;  %144 = vmatpush.bf16.msra.mxu1 %v99_v20  ;;  %v111_v35 = vsel %vm94_vm0, %v84_v33, 0 }
   0xa   :  { %813 = vperm.xlu1 %2015, %v810_v25   ;;  %1934 = vmatmul.msk.bf16.vlgmr.msra.gmra.mxu2 %vm87_vm1, %v47_v21 }
   0xb   :  { %234 = vmatpush.bf16.msrb.mxu2 %v114_v29  ;;  %59 = vperm.xlu0 %2014, %v50_v26  }
   0xc   :  { %1930 = vmatmul.msk.bf16.vlgmr.msra.gmra.mxu0 %vm87_vm1, %v47_v21  ;;  %1932 = vmatmul.msk.bf16.vlgmr.msra.gmra.mxu1 %vm87_vm1, %v47_v21 }
   0xd   :  { %1936 = vmatmul.msk.bf16.vlgmr.msra.gmra.mxu3 %vm87_vm1, %v47_v21  ;;  %198 = vmatpush.bf16.msrb.mxu0 %v108_v34 }
   0xe   :  { %252 = vmatpush.bf16.msrb.mxu3 %v117_v32  ;;  %216 = vmatpush.bf16.msrb.mxu1 %v111_v35 }
  0x12   :  { %911 = vperm.xlu1 %2015, %v1967_v36  }
  0x13   :  { %1114 = vperm.xlu0 %2014, %v1976_v37  }
  0x1a   :  { %1366 = vperm.xlu1 %2015, %v1988_v39   ;;  %1935 = vmatmul.msk.bf16.gmra.mxu2 %vm87_vm1, %v48_v41 }
  0x1b   :  { %1317 = vperm.xlu0 %2014, %v1985_v40  }
  0x1c   :  { %1931 = vmatmul.msk.bf16.gmra.mxu0 %vm87_vm1, %v48_v41  ;;  %1933 = vmatmul.msk.bf16.gmra.mxu1 %vm87_vm1, %v48_v41 }
  0x1d   :  { %1937 = vmatmul.msk.bf16.gmra.mxu3 %vm87_vm1, %v48_v41 }
  0x22   :  { %1415 = vperm.xlu1 %2015, %v1991_v42  }
  0x23   :  { %1212 = vperm.xlu0 %2014, %v1982_v43  }
  0x2a   :  { %1464 = vperm.xlu1 %2015, %v1994_v44   ;;  %1942 = vmatmul.msk.bf16.vlgmr.msrb.gmra.mxu2 %vm87_vm1, %v47_v21 }
  0x2b   :  { %1618 = vperm.xlu0 %2014, %v2000_v45  }
  0x2c   :  { %1938 = vmatmul.msk.bf16.vlgmr.msrb.gmra.mxu0 %vm87_vm1, %v47_v21  ;;  %1940 = vmatmul.msk.bf16.vlgmr.msrb.gmra.mxu1 %vm87_vm1, %v47_v21 }
  0x2d   :  { %1944 = vmatmul.msk.bf16.vlgmr.msrb.gmra.mxu3 %vm87_vm1, %v47_v21 }
  0x32   :  { %64 = vperm.xlu1 %2015, %v51_v46  }
  0x33   :  { %1716 = vperm.xlu0 %2014, %v2006_v47  }
  0x3a   :  { %1943 = vmatmul.msk.bf16.gmra.mxu2 %vm87_vm1, %v48_v41  ;;  %1919 = vperm.xlu1 %2015, %v1911_v9  }
  0x3b   :  { %1914 = vperm.xlu0 %2014, %v1910_v48  }
  0x3c   :  { %1939 = vmatmul.msk.bf16.gmra.mxu0 %vm87_vm1, %v48_v41  ;;  %1941 = vmatmul.msk.bf16.gmra.mxu1 %vm87_vm1, %v48_v41 }
  0x3d   :  { %1945 = vmatmul.msk.bf16.gmra.mxu3 %vm87_vm1, %v48_v41 }
  0x75   :  { %v55_v49 = vpop.permute.xlu0 %54 }
  0x7d   :  { %v60_v10 = vpop.permute.xlu0 %59 }
  0x89   :  { %v128_v50 = vpop.f32.mrf.mxu0  ;;  %v146_v51 = vpop.f32.mrf.mxu1 }
  0x8a   :  { %v2280_v52 = vadd.f32 %v128_v50, %v55_v49  ;;  %v2282_v53 = vadd.f32 %v146_v51, %v55_v49 }
  0x8c   :  { %v263_v54 = vmul.f32 %v2280_v52, %v2280_v52  ;;  %v264_v55 = vmul.f32 %v2282_v53, %v2282_v53 }
  0x8d   :  { %v164_v57 = vpop.f32.mrf.mxu2 }
  0x8e   :  { %289 = vmatpush.msra.mxu0 %v263_v54  ;;  %309 = vmatpush.msra.mxu1 %v264_v55  ;;  %v2297_v59 = vadd.f32 %v164_v57, %v55_v49 }
  0x8f   :  { %1946 = vmatmul.msk.f32.vlgmr.msra.gmra.mxu0 %vm87_vm1, %v2291_v56  ;;  %1947 = vmatmul.msk.f32.vlgmr.msra.gmra.mxu1 %vm87_vm1, %v2291_v56 }
  0x90   :  { %v182_v58 = vpop.f32.mrf.mxu3  ;;  %v265_v63 = vmul.f32 %v2297_v59, %v2297_v59 }
  0x91   :  { %v2299_v60 = vadd.f32 %v182_v58, %v55_v49  ;;  %v130_v61 = vpop.f32.mrf.mxu0  ;;  %v148_v62 = vpop.f32.mrf.mxu1 }
  0x92   :  { %329 = vmatpush.msra.mxu2 %v265_v63  ;;  %v2320_v15 = vadd.f32 %v130_v61, %v60_v10  ;;  %v2322_v16 = vadd.f32 %v148_v62, %v60_v10 }
  0x93   :  { %v266_v0 = vmul.f32 %v2299_v60, %v2299_v60  ;;  %1948 = vmatmul.msk.f32.vlgmr.msra.gmra.mxu2 %vm87_vm1, %v2291_v56 }
  0x94   :  { %v530_v21 = vmul.f32 %v2320_v15, %v2320_v15  ;;  %v531_v22 = vmul.f32 %v2322_v16, %v2322_v16 }
  0x95   :  { %349 = vmatpush.msra.mxu3 %v266_v0  ;;  %v166_v1 = vpop.f32.mrf.mxu2 }
  0x96   :  { %1949 = vmatmul.msk.f32.vlgmr.msra.gmra.mxu3 %vm87_vm1, %v2291_v56  ;;  %v2340_v25 = vadd.f32 %v166_v1, %v60_v10 }
  0x98   :  { %v184_v2 = vpop.f32.mrf.mxu3  ;;  %v532_v37 = vmul.f32 %v2340_v25, %v2340_v25 }
  0x99   :  { %v2309_v3 = vpop.f32.mrf.mxu0  ;;  %v2311_v4 = vpop.f32.mrf.mxu1  ;;  %v2342_v26 = vadd.f32 %v184_v2, %v60_v10 }
  0x9b   :  { %v533_v38 = vmul.f32 %v2342_v26, %v2342_v26 }
  0x9d   :  { %v2313_v5 = vpop.f32.mrf.mxu2 }
  0xa0   :  { %v2315_v6 = vpop.f32.mrf.mxu3 }
  0xa1   :  { %v135_v7 = vpop.f32.mrf.mxu0  ;;  %v153_v8 = vpop.f32.mrf.mxu1 }
  0xa5   :  { %v171_v11 = vpop.f32.mrf.mxu2 }
  0xa8   :  { %v189_v12 = vpop.f32.mrf.mxu3 }
  0xa9   :  { %v200_v13 = vpop.f32.mrf.mxu0  ;;  %v218_v14 = vpop.f32.mrf.mxu1 }
  0xaa   :  { %v2324_v17 = vadd.f32 %v200_v13, %v55_v49  ;;  %v2326_v18 = vadd.f32 %v218_v14, %v55_v49 }
  0xac   :  { %v267_v19 = vmul.f32 %v2324_v17, %v2324_v17  ;;  %v268_v20 = vmul.f32 %v2326_v18, %v2326_v18 }
  0xad   :  { %v236_v23 = vpop.f32.mrf.mxu2 }
  0xae   :  { %369 = vmatpush.msrb.mxu0 %v267_v19  ;;  %389 = vmatpush.msrb.mxu1 %v268_v20  ;;  %v2344_v27 = vadd.f32 %v236_v23, %v55_v49 }
  0xaf   :  { %1950 = vmatmul.msk.f32.vlgmr.msrb.gmra.mxu0 %vm87_vm1, %v2291_v56  ;;  %1951 = vmatmul.msk.f32.vlgmr.msrb.gmra.mxu1 %vm87_vm1, %v2291_v56 }
  0xb0   :  { %v254_v24 = vpop.f32.mrf.mxu3  ;;  %553 = vmatpush.msra.mxu0 %v530_v21  ;;  %573 = vmatpush.msra.mxu1 %v531_v22  ;;  %v269_v33 = vmul.f32 %v2344_v27, %v2344_v27 }
  0xb1   :  { %v2346_v28 = vadd.f32 %v254_v24, %v55_v49  ;;  %v202_v29 = vpop.f32.mrf.mxu0  ;;  %v220_v30 = vpop.f32.mrf.mxu1 }
  0xb2   :  { %v2348_v31 = vadd.f32 %v202_v29, %v60_v10  ;;  %v2350_v32 = vadd.f32 %v220_v30, %v60_v10  ;;  %409 = vmatpush.msrb.mxu2 %v269_v33 }
  0xb3   :  { %v270_v34 = vmul.f32 %v2346_v28, %v2346_v28  ;;  %1952 = vmatmul.msk.f32.vlgmr.msrb.gmra.mxu2 %vm87_vm1, %v2291_v56 }
  0xb4   :  { %v534_v35 = vmul.f32 %v2348_v31, %v2348_v31  ;;  %v535_v36 = vmul.f32 %v2350_v32, %v2350_v32  ;;  %593 = vmatpush.msra.mxu2 %v532_v37 }
  0xb5   :  { %429 = vmatpush.msrb.mxu3 %v270_v34  ;;  %v238_v39 = vpop.f32.mrf.mxu2 }
  0xb6   :  { %1953 = vmatmul.msk.f32.vlgmr.msrb.gmra.mxu3 %vm87_vm1, %v2291_v56  ;;  %633 = vmatpush.msrb.mxu0 %v534_v35  ;;  %v2368_v41 = vadd.f32 %v238_v39, %v60_v10 }
  0xb7   :  { %613 = vmatpush.msra.mxu3 %v533_v38  ;;  %653 = vmatpush.msrb.mxu1 %v535_v36 }
  0xb8   :  { %v256_v40 = vpop.f32.mrf.mxu3  ;;  %1954 = vmatmul.msk.f32.vlgmr.msra.gmra.mxu0 %vm87_vm1, %v2291_v56  ;;  %1955 = vmatmul.msk.f32.vlgmr.msra.gmra.mxu1 %vm87_vm1, %v2291_v56  ;;  %v536_v45 = vmul.f32 %v2368_v41, %v2368_v41 }
  0xb9   :  { %v2370_v42 = vadd.f32 %v256_v40, %v60_v10  ;;  %v2376_v43 = vpop.f32.mrf.mxu0  ;;  %v2378_v44 = vpop.f32.mrf.mxu1 }
  0xba   :  { %673 = vmatpush.msrb.mxu2 %v536_v45 }
  0xbb   :  { %v537_v46 = vmul.f32 %v2370_v42, %v2370_v42  ;;  %1956 = vmatmul.msk.f32.vlgmr.msra.gmra.mxu2 %vm87_vm1, %v2291_v56 }
  0xbd   :  { %693 = vmatpush.msrb.mxu3 %v537_v46  ;;  %v2388_v47 = vpop.f32.mrf.mxu2 }
  0xbe   :  { %1957 = vmatmul.msk.f32.vlgmr.msra.gmra.mxu3 %vm87_vm1, %v2291_v56 }
  0xc0   :  { %v2390_v48 = vpop.f32.mrf.mxu3  ;;  %1958 = vmatmul.msk.f32.vlgmr.msrb.gmra.mxu0 %vm87_vm1, %v2291_v56  ;;  %1959 = vmatmul.msk.f32.vlgmr.msrb.gmra.mxu1 %vm87_vm1, %v2291_v56 }
  0xc1   :  { %v207_v49 = vpop.f32.mrf.mxu0  ;;  %v225_v50 = vpop.f32.mrf.mxu1 }
  0xc3   :  { %1960 = vmatmul.msk.f32.vlgmr.msrb.gmra.mxu2 %vm87_vm1, %v2291_v56 }
  0xc5   :  { %v243_v51 = vpop.f32.mrf.mxu2 }
  0xc6   :  { %1961 = vmatmul.msk.f32.vlgmr.msrb.gmra.mxu3 %vm87_vm1, %v2291_v56 }
  0xc8   :  { %v261_v54 = vpop.f32.mrf.mxu3 }
 0x10c   :  { %v291_v55 = vpop.f32.mrf.mxu0  ;;  %v311_v58 = vpop.f32.mrf.mxu1 }
 0x10d   :  { %v434_v57 = vmax.f32 %v291_v55, 1e-24  ;;  %v435_v61 = vmax.f32 %v311_v58, 1e-24 }
 0x10f   :  { %2017 = vrsqrt.f32 %v434_v57  ;;  %vm448_vm2 = vweird.f32 %v434_v57  ;;  %vm458_vm5 = vweird.f32 %v435_v61 }
 0x110   :  { %2019 = vrsqrt.f32 %v435_v61 }
 0x115   :  { %v2018_v2 = vpop.eup %2017 }
 0x116   :  { %v331_v62 = vpop.f32.mrf.mxu2  ;;  %v2405_v7 = vpop.eup %2019  ;;  %v443_v8 = vmul.f32 %v2018_v2, %v434_v57  ;;  %vm449_vm3 = vweird.f32 %v2018_v2 }
 0x117   :  { %v2400_v0 = vmax.f32 %v331_v62, 1e-24  ;;  %v453_v9 = vmul.f32 %v2405_v7, %v435_v61  ;;  %vm2431_vm4 = vmor %vm448_vm2, %vm449_vm3  ;;  %vm459_vm6 = vweird.f32 %v2405_v7 }
 0x118   :  { %v444_v10 = vmul.f32 %v2018_v2, %v443_v8  ;;  %vm2444_vm7 = vmor %vm458_vm5, %vm459_vm6 }
 0x119   :  { %v351_v63 = vpop.f32.mrf.mxu3  ;;  %2021 = vrsqrt.f32 %v2400_v0  ;;  %v454_v19 = vmul.f32 %v2405_v7, %v453_v9  ;;  %vm468_vm8 = vweird.f32 %v2400_v0 }
 0x11a   :  { %v2402_v1 = vmax.f32 %v351_v63, 1e-24  ;;  %v445_v21 = vmul.f32 0.5, %v444_v10 }
 0x11b   :  { %v455_v24 = vmul.f32 0.5, %v454_v19 }
 0x11c   :  { %2023 = vrsqrt.f32 %v2402_v1  ;;  %v446_v29 = vsub.f32 1.5, %v445_v21  ;;  %vm478_vm10 = vweird.f32 %v2402_v1 }
 0x11d   :  { %v456_v35 = vsub.f32 1.5, %v455_v24 }
 0x11e   :  { %v447_v38 = vmul.f32 %v2018_v2, %v446_v29 }
 0x11f   :  { %v2409_v11 = vpop.eup %2021  ;;  %v457_v57 = vmul.f32 %v2405_v7, %v456_v35 }
 0x120   :  { %v463_v22 = vmul.f32 %v2409_v11, %v2400_v0  ;;  %v451_v55 = vsel %vm2431_vm4, %v2018_v2, %v447_v38  ;;  %vm469_vm9 = vweird.f32 %v2409_v11 }
 0x121   :  { %v522_v9 = vmul.f32 %v451_v55, %v2280_v52  ;;  %v2464_v52 = vpop.permute.xlu1 %797  ;;  %vm2468_vm12 = vmor %vm468_vm8, %vm469_vm9 }
 0x122   :  { %v2411_v14 = vpop.eup %2023  ;;  %v464_v30 = vmul.f32 %v2409_v11, %v463_v22 }
 0x123   :  { %v473_v23 = vmul.f32 %v2411_v14, %v2402_v1  ;;  %vm479_vm11 = vweird.f32 %v2411_v14 }
 0x124   :  { %v465_v39 = vmul.f32 0.5, %v464_v30  ;;  %vm2474_vm13 = vmor %vm478_vm10, %vm479_vm11 }
 0x125   :  { %v474_v33 = vmul.f32 %v2411_v14, %v473_v23 }
 0x126   :  { %v466_v58 = vsub.f32 1.5, %v465_v39 }
 0x127   :  { %v475_v50 = vmul.f32 0.5, %v474_v33 }
 0x128   :  { %v467_v19 = vmul.f32 %v2409_v11, %v466_v58 }
 0x129   :  { %v476_v61 = vsub.f32 1.5, %v475_v50 }
 0x12a   :  { %v471_v49 = vsel %vm2468_vm12, %v2409_v11, %v467_v19 }
 0x12b   :  { %v477_v24 = vmul.f32 %v2411_v14, %v476_v61 }
 0x12c   :  { %v371_v12 = vpop.f32.mrf.mxu0  ;;  %v391_v13 = vpop.f32.mrf.mxu1 }
 0x12d   :  { %v2414_v20 = vmax.f32 %v371_v12, 1e-24  ;;  %v2423_v34 = vmax.f32 %v391_v13, 1e-24  ;;  %v461_v13 = vsel %vm2444_vm7, %v2405_v7, %v457_v57  ;;  %v481_v58 = vsel %vm2474_vm13, %v2411_v14, %v477_v24 }
 0x12e   :  { %v523_v38 = vmul.f32 %v461_v13, %v2282_v53  ;;  %v524_v13 = vmul.f32 %v471_v49, %v2297_v59  ;;  %v525_v19 = vmul.f32 %v481_v58, %v2299_v60 }
 0x12f   :  { %2025 = vrsqrt.f32 %v2414_v20  ;;  %vm488_vm5 = vweird.f32 %v2414_v20  ;;  %vm498_vm9 = vweird.f32 %v2423_v34 }
 0x130   :  { %2027 = vrsqrt.f32 %v2423_v34  ;;  %v2533_v60 = vmul.f32 %v2464_v52, %v523_v38 }
 0x135   :  { %v555_v36 = vpop.f32.mrf.mxu0  ;;  %v575_v37 = vpop.f32.mrf.mxu1 }
 0x136   :  { %v2425_v40 = vmax.f32 %v555_v36, 1e-24  ;;  %v2427_v45 = vmax.f32 %v575_v37, 1e-24  ;;  %v2429_v46 = vpop.eup %2025  ;;  %v411_v51 = vpop.f32.mrf.mxu2  ;;  %v2485_v37 = vmul.f32 %v2464_v52, %v522_v9 }
 0x137   :  { %v483_v62 = vmul.f32 %v2429_v46, %v2414_v20  ;;  %v2450_v8 = vpop.eup %2027  ;;  %v2493_v57 = vmax.f32 %v411_v51, 1e-24  ;;  %vm489_vm6 = vweird.f32 %v2429_v46 }
 0x138   :  { %2029 = vrsqrt.f32 %v2425_v40  ;;  %v493_v30 = vmul.f32 %v2450_v8, %v2423_v34  ;;  %vm712_vm14 = vweird.f32 %v2425_v40  ;;  %vm722_vm2 = vweird.f32 %v2427_v45  ;;  %vm2559_vm8 = vmor %vm488_vm5, %vm489_vm6 }
 0x139   :  { %v431_v54 = vpop.f32.mrf.mxu3  ;;  %2031 = vrsqrt.f32 %v2427_v45  ;;  %v484_v21 = vmul.f32 %v2429_v46, %v483_v62 }
 0x13a   :  { %v494_v53 = vmul.f32 %v2450_v8, %v493_v30 }
 0x13b   :  { %v485_v50 = vmul.f32 0.5, %v484_v21 }
 0x13c   :  { %v495_v24 = vmul.f32 0.5, %v494_v53 }
 0x13d   :  { %v635_v2 = vpop.f32.mrf.mxu0  ;;  %v655_v10 = vpop.f32.mrf.mxu1  ;;  %v486_v9 = vsub.f32 1.5, %v485_v50 }
 0x13e   :  { %v2030_v12 = vpop.eup %2029  ;;  %v2460_v22 = vmax.f32 %v635_v2, 1e-24  ;;  %v2482_v35 = vmax.f32 %v655_v10, 1e-24  ;;  %v595_v0 = vpop.f32.mrf.mxu2  ;;  %v2512_v2 = vmax.f32 %v431_v54, 1e-24 }
 0x13f   :  { %v2462_v23 = vpop.eup %2031  ;;  %v707_v7 = vmul.f32 %v2030_v12, %v2425_v40  ;;  %vm713_vm15 = vweird.f32 %v2030_v12  ;;  %v2503_v51 = vmax.f32 %v595_v0, 1e-24  ;;  %v496_v53 = vsub.f32 1.5, %v495_v24 }
 0x140   :  { %v717_v33 = vmul.f32 %v2462_v23, %v2427_v45  ;;  %2033 = vrsqrt.f32 %v2460_v22  ;;  %vm723_vm3 = vweird.f32 %v2462_v23  ;;  %vm2507_vm4 = vmor %vm712_vm14, %vm713_vm15  ;;  %v1964_v45 = vld [vmem:[%s3033_s5 + $0x8] sm:$0xff]  ;;  %vm752_vm10 = vweird.f32 %v2460_v22 }
 0x141   :  { %v615_v36 = vpop.f32.mrf.mxu3  ;;  %v708_v39 = vmul.f32 %v2030_v12, %v707_v7  ;;  %2035 = vrsqrt.f32 %v2482_v35  ;;  %vm2526_vm7 = vmor %vm722_vm2, %vm723_vm3  ;;  %862 = vperm.xlu2 %2016, %v1964_v45   ;;  %vm762_vm13 = vweird.f32 %v2482_v35  ;;  %v2610_v24 = vmul.f32 %v2450_v8, %v496_v53 }
 0x142   :  { %v718_v55 = vmul.f32 %v2462_v23, %v717_v33  ;;  %v2505_v61 = vmax.f32 %v615_v36, 1e-24  ;;  %2037 = vrsqrt.f32 %v2493_v57  ;;  %v487_v33 = vmul.f32 %v2429_v46, %v486_v9 }
 0x143   :  { %v709_v62 = vmul.f32 0.5, %v708_v39  ;;  %2039 = vrsqrt.f32 %v2503_v51  ;;  %v2553_v39 = vmul.f32 %v2464_v52, %v525_v19  ;;  %vm499_vm15 = vweird.f32 %v2450_v8 }
 0x144   :  { %v719_v63 = vmul.f32 0.5, %v718_v55  ;;  %2041 = vrsqrt.f32 %v2505_v61  ;;  %v491_v9 = vsel %vm2559_vm8, %v2429_v46, %v487_v33  ;;  %vm2655_vm6 = vmor %vm498_vm9, %vm499_vm15  ;;  %vm742_vm8 = vweird.f32 %v2505_v61 }
 0x145   :  { %v710_v11 = vsub.f32 1.5, %v709_v62  ;;  %2043 = vrsqrt.f32 %v2512_v2 }
 0x146   :  { %v720_v40 = vsub.f32 1.5, %v719_v63  ;;  %v2514_v10 = vpop.eup %2033  ;;  %v675_v29 = vpop.f32.mrf.mxu2 }
 0x147   :  { %v711_v21 = vmul.f32 %v2030_v12, %v710_v11  ;;  %v747_v59 = vmul.f32 %v2514_v10, %v2460_v22  ;;  %v2541_v30 = vpop.eup %2035  ;;  %vm753_vm11 = vweird.f32 %v2514_v10  ;;  %v2573_v20 = vmax.f32 %v675_v29, 1e-24  ;;  %v1973_v29 = vld [vmem:[%s3033_s5 + $0x20] sm:$0xff] }
 0x148   :  { %v721_v1 = vmul.f32 %v2462_v23, %v720_v40  ;;  %v757_v50 = vmul.f32 %v2541_v30, %v2482_v35  ;;  %v2569_v55 = vpop.eup %2037  ;;  %vm2592_vm12 = vmor %vm752_vm10, %vm753_vm11  ;;  %vm763_vm14 = vweird.f32 %v2541_v30 }
 0x149   :  { %v715_v7 = vsel %vm2507_vm4, %v2030_v12, %v711_v21  ;;  %v748_v36 = vmul.f32 %v2514_v10, %v747_v59  ;;  %v695_v38 = vpop.f32.mrf.mxu3  ;;  %v2550_v12 = vmul.f32 %v2464_v52, %v524_v13  ;;  %v2575_v62 = vpop.eup %2039  ;;  %2045 = vrsqrt.f32 %v2573_v20  ;;  %vm2624_vm2 = vmor %vm762_vm13, %vm763_vm14  ;;  %1065 = vperm.xlu2 %2016, %v1973_v29  }
 0x14a   :  { %v2545_v0 = vmul.f32 %v715_v7, %v2320_v15  ;;  %v725_v15 = vsel %vm2526_vm7, %v2462_v23, %v721_v1  ;;  %v758_v63 = vmul.f32 %v2541_v30, %v757_v50  ;;  %v2578_v11 = vmax.f32 %v695_v38, 1e-24  ;;  %v2590_v13 = vpop.eup %2041 }
 0x14b   :  { %v749_v58 = vmul.f32 0.5, %v748_v36  ;;  %v2586_v22 = vmul.f32 %v725_v15, %v2322_v16  ;;  %v727_v40 = vmul.f32 %v2575_v62, %v2503_v51  ;;  %v2599_v16 = vpop.eup %2043  ;;  %v503_v46 = vmul.f32 %v2569_v55, %v2493_v57 }
 0x14c   :  { %v808_v23 = vmul.f32 %v2485_v37, %v2545_v0  ;;  %v759_v21 = vmul.f32 0.5, %v758_v63  ;;  %v737_v59 = vmul.f32 %v2590_v13, %v2505_v61  ;;  %2047 = vrsqrt.f32 %v2578_v11 }
 0x14d   :  { %v750_v14 = vsub.f32 1.5, %v749_v58  ;;  %v728_v54 = vmul.f32 %v2575_v62, %v727_v40  ;;  %v809_v49 = vmul.f32 %v2533_v60, %v2586_v22  ;;  %v526_v15 = vmul.f32 %v491_v9, %v2324_v17 }
 0x14e   :  { %831 = vmatpush.msra.mxu0 %v808_v23  ;;  %v760_v7 = vsub.f32 1.5, %v759_v21  ;;  %v738_v38 = vmul.f32 %v2590_v13, %v737_v59  ;;  %v504_v58 = vmul.f32 %v2569_v55, %v503_v46  ;;  %vm733_vm3 = vweird.f32 %v2575_v62 }
 0x14f   :  { %v751_v1 = vmul.f32 %v2514_v10, %v750_v14  ;;  %1962 = vmatmul.msk.f32.vlgmr.msra.gmra.mxu0 %vm87_vm1, %v2291_v56  ;;  %v729_v36 = vmul.f32 0.5, %v728_v54  ;;  %851 = vmatpush.msra.mxu1 %v809_v49  ;;  %v2640_v23 = vpop.eup %2045  ;;  %vm732_vm4 = vweird.f32 %v2503_v51  ;;  %vm743_vm5 = vweird.f32 %v2590_v13 }
 0x150   :  { %v761_v35 = vmul.f32 %v2541_v30, %v760_v7  ;;  %v739_v63 = vmul.f32 0.5, %v738_v38  ;;  %1963 = vmatmul.msk.f32.vlgmr.msra.gmra.mxu1 %vm87_vm1, %v2291_v56  ;;  %v767_v40 = vmul.f32 %v2640_v23, %v2573_v20  ;;  %vm734_vm7 = vmor %vm732_vm4, %vm733_vm3  ;;  %v501_v61 = vsel %vm2655_vm6, %v2450_v8, %v2610_v24 }
 0x151   :  { %v755_v45 = vsel %vm2592_vm12, %v2514_v10, %v751_v1  ;;  %v513_v10 = vmul.f32 %v2599_v16, %v2512_v2  ;;  %v730_v53 = vsub.f32 1.5, %v729_v36  ;;  %v505_v7 = vmul.f32 0.5, %v504_v58  ;;  %vm744_vm9 = vmor %vm742_vm8, %vm743_vm5 }
 0x152   :  { %v2635_v50 = vmul.f32 %v755_v45, %v2348_v31  ;;  %v765_v17 = vsel %vm2624_vm2, %v2541_v30, %v761_v35  ;;  %v740_v14 = vsub.f32 1.5, %v739_v63  ;;  %v2665_v19 = vpop.eup %2047  ;;  %v768_v54 = vmul.f32 %v2640_v23, %v767_v40  ;;  %v1979_v45 = vld [vmem:[%s3033_s5 + $0x30] sm:$0xff] }
 0x153   :  { %v2660_v30 = vmul.f32 %v765_v17, %v2350_v32  ;;  %v731_v51 = vmul.f32 %v2575_v62, %v730_v53  ;;  %v514_v21 = vmul.f32 %v2599_v16, %v513_v10  ;;  %v1059_v32 = vmul.f32 %v2550_v12, %v2545_v0  ;;  %1163 = vperm.xlu2 %2016, %v1979_v45  }
 0x154   :  { %v905_v31 = vmul.f32 %v2485_v37, %v2635_v50  ;;  %v1157_v34 = vmul.f32 %v2550_v12, %v2635_v50  ;;  %v741_v1 = vmul.f32 %v2590_v13, %v740_v14  ;;  %v777_v59 = vmul.f32 %v2665_v19, %v2578_v11 }
 0x155   :  { %v735_v46 = vsel %vm734_vm7, %v2575_v62, %v731_v51  ;;  %v906_v62 = vmul.f32 %v2533_v60, %v2660_v30  ;;  %v769_v36 = vmul.f32 0.5, %v768_v54  ;;  %v515_v24 = vmul.f32 0.5, %v514_v21 }
 0x156   :  { %929 = vmatpush.msrb.mxu0 %v905_v31  ;;  %v2687_v29 = vmul.f32 %v735_v46, %v2340_v25  ;;  %v745_v33 = vsel %vm744_vm9, %v2590_v13, %v741_v1  ;;  %v778_v8 = vmul.f32 %v2665_v19, %v777_v59  ;;  %v1060_v25 = vmul.f32 %v2553_v39, %v2586_v22 }
 0x157   :  { %1968 = vmatmul.msk.f32.vlgmr.msrb.gmra.mxu0 %vm87_vm1, %v2291_v56  ;;  %v2701_v38 = vmul.f32 %v745_v33, %v2342_v26  ;;  %949 = vmatpush.msrb.mxu1 %v906_v62  ;;  %v770_v10 = vsub.f32 1.5, %v769_v36  ;;  %vm773_vm10 = vweird.f32 %v2640_v23  ;;  %v1158_v35 = vmul.f32 %v2553_v39, %v2660_v30  ;;  %v2003_v62 = vld [vmem:[%s3033_s5 + $0x70] sm:$0xff] }
 0x158   :  { %1083 = vmatpush.msra.mxu0 %v1059_v32  ;;  %v856_v49 = vmul.f32 %v2485_v37, %v2687_v29  ;;  %v779_v13 = vmul.f32 0.5, %v778_v8  ;;  %v2709_v58 = vmul.f32 %v2464_v52, %v526_v15  ;;  %v527_v53 = vmul.f32 %v501_v61, %v2326_v18  ;;  %1969 = vmatmul.msk.f32.vlgmr.msrb.gmra.mxu1 %vm87_vm1, %v2291_v56 }
 0x159   :  { %1103 = vmatpush.msra.mxu1 %v1060_v25  ;;  %v506_v63 = vsub.f32 1.5, %v505_v7  ;;  %v857_v26 = vmul.f32 %v2533_v60, %v2701_v38  ;;  %v771_v17 = vmul.f32 %v2640_v23, %v770_v10  ;;  %vm772_vm11 = vweird.f32 %v2573_v20  ;;  %v814_v25 = vpop.permute.xlu1 %813 }
 0x15a   :  { %1181 = vmatpush.msrb.mxu0 %v1157_v34  ;;  %880 = vmatpush.msra.mxu2 %v856_v49  ;;  %v780_v31 = vsub.f32 1.5, %v779_v13  ;;  %vm783_vm12 = vweird.f32 %v2665_v19  ;;  %vm774_vm13 = vmor %vm772_vm11, %vm773_vm10  ;;  %v1311_v18 = vmul.f32 %v2709_v58, %v2545_v0  ;;  %v516_v15 = vsub.f32 1.5, %v515_v24 }
 0x15b   :  { %1201 = vmatpush.msrb.mxu1 %v1158_v35  ;;  %1965 = vmatmul.msk.f32.vlgmr.msra.gmra.mxu2 %vm87_vm1, %v2291_v56  ;;  %v775_v9 = vsel %vm774_vm13, %v2640_v23, %v771_v17  ;;  %vm782_vm14 = vweird.f32 %v2578_v11  ;;  %v507_v20 = vmul.f32 %v2569_v55, %v506_v63  ;;  %vm509_vm15 = vweird.f32 %v2569_v55  ;;  %v1970_v11 = vld [vmem:[%s3033_s5 + $0x18] sm:$0xff] }
 0x15c   :  { %900 = vmatpush.msra.mxu3 %v857_v26  ;;  %v781_v51 = vmul.f32 %v2665_v19, %v780_v31  ;;  %v2735_v14 = vmul.f32 %v775_v9, %v2368_v41  ;;  %vm784_vm2 = vmor %vm782_vm14, %vm783_vm12  ;;  %v805_v23 = vmul.f32 %v2464_v52, %v527_v53  ;;  %960 = vperm.xlu2 %2016, %v1970_v11   ;;  %vm508_vm3 = vweird.f32 %v2493_v57 }
 0x15d   :  { %1966 = vmatmul.msk.f32.vlgmr.msra.gmra.mxu3 %vm87_vm1, %v2291_v56  ;;  %vm2750_vm4 = vmor %vm508_vm3, %vm509_vm15  ;;  %v517_v34 = vmul.f32 %v2599_v16, %v516_v15  ;;  %vm519_vm5 = vweird.f32 %v2599_v16  ;;  %vm518_vm6 = vweird.f32 %v2512_v2 }
 0x15e   :  { %v785_v40 = vsel %vm784_vm2, %v2665_v19, %v781_v51  ;;  %v954_v41 = vmul.f32 %v2485_v37, %v2735_v14  ;;  %v1312_v46 = vmul.f32 %v805_v23, %v2586_v22  ;;  %v511_v19 = vsel %vm2750_vm4, %v2569_v55, %v507_v20  ;;  %vm520_vm7 = vmor %vm518_vm6, %vm519_vm5  ;;  %v1115_v51 = vpop.permute.xlu0 %1114 }
 0x15f   :  { %1974 = vmatmul.msk.f32.vlgmr.msra.gmra.mxu0 %vm87_vm1, %v2291_v56  ;;  %v2746_v21 = vmul.f32 %v785_v40, %v2370_v42  ;;  %v1108_v37 = vmul.f32 %v2550_v12, %v2687_v29  ;;  %v1206_v57 = vmul.f32 %v2550_v12, %v2735_v14  ;;  %v1109_v55 = vmul.f32 %v2553_v39, %v2701_v38 }
 0x160   :  { %1335 = vmatpush.msra.mxu0 %v1311_v18  ;;  %1975 = vmatmul.msk.f32.vlgmr.msra.gmra.mxu1 %vm87_vm1, %v2291_v56  ;;  %v528_v1 = vmul.f32 %v511_v19, %v2344_v27  ;;  %v1409_v12 = vmul.f32 %v2709_v58, %v2635_v50  ;;  %v521_v2 = vsel %vm520_vm7, %v2599_v16, %v517_v34  ;;  %v1997_v27 = vld [vmem:[%s3033_s5 + $0x60] sm:$0xff] }
 0x161   :  { %978 = vmatpush.msrb.mxu2 %v954_v41  ;;  %v955_v42 = vmul.f32 %v2533_v60, %v2746_v21  ;;  %1355 = vmatpush.msra.mxu1 %v1312_v46  ;;  %v1207_v60 = vmul.f32 %v2553_v39, %v2746_v21  ;;  %v529_v39 = vmul.f32 %v521_v2, %v2346_v28 }
 0x162   :  { %v806_v54 = vmul.f32 %v2464_v52, %v528_v1  ;;  %v1410_v59 = vmul.f32 %v805_v23, %v2660_v30  ;;  %v1360_v16 = vmul.f32 %v2709_v58, %v2687_v29  ;;  %v1361_v61 = vmul.f32 %v805_v23, %v2701_v38 }
 0x163   :  { %1971 = vmatmul.msk.f32.vlgmr.msrb.gmra.mxu2 %vm87_vm1, %v2291_v56  ;;  %998 = vmatpush.msrb.mxu3 %v955_v42  ;;  %v807_v7 = vmul.f32 %v2464_v52, %v529_v39  ;;  %v1458_v52 = vmul.f32 %v2709_v58, %v2735_v14 }
 0x164   :  { %1132 = vmatpush.msra.mxu2 %v1108_v37  ;;  %1569 = vperm.xlu2 %2016, %v1997_v27   ;;  %v1563_v28 = vmul.f32 %v806_v54, %v2545_v0  ;;  %v1459_v0 = vmul.f32 %v805_v23, %v2746_v21  ;;  %v1661_v33 = vmul.f32 %v806_v54, %v2635_v50 }
 0x165   :  { %1972 = vmatmul.msk.f32.vlgmr.msrb.gmra.mxu3 %vm87_vm1, %v2291_v56  ;;  %v1564_v45 = vmul.f32 %v807_v7, %v2586_v22  ;;  %v1821_v22 = vld [vmem:[%s3036_s7] sm:$0xff]  ;;  %v1662_v36 = vmul.f32 %v807_v7, %v2660_v30  ;;  %v1612_v8 = vmul.f32 %v806_v54, %v2687_v29  ;;  %v1613_v50 = vmul.f32 %v807_v7, %v2701_v38  ;;  %v912_v38 = vpop.permute.xlu1 %911 }
 0x166   :  { %1230 = vmatpush.msrb.mxu2 %v1206_v57  ;;  %1152 = vmatpush.msra.mxu3 %v1109_v55  ;;  %v1710_v30 = vmul.f32 %v806_v54, %v2735_v14  ;;  %v1711_v29 = vmul.f32 %v807_v7, %v2746_v21  ;;  %v2866_v39 = vpop.permute.xlu0 %1317 }
 0x167   :  { %1980 = vmatmul.msk.f32.vlgmr.msrb.gmra.mxu0 %vm87_vm1, %v2291_v56 }
 0x168   :  { %1250 = vmatpush.msrb.mxu3 %v1207_v60  ;;  %1433 = vmatpush.msrb.mxu0 %v1409_v12 }
 0x169   :  { %1981 = vmatmul.msk.f32.vlgmr.msrb.gmra.mxu1 %vm87_vm1, %v2291_v56 }
 0x16a   :  { %1453 = vmatpush.msrb.mxu1 %v1410_v59 }
 0x16b   :  { %1977 = vmatmul.msk.f32.vlgmr.msra.gmra.mxu2 %vm87_vm1, %v2291_v56 }
 0x16c   :  { %1384 = vmatpush.msra.mxu2 %v1360_v16  ;;  %1667 = vperm.xlu2 %2016, %v2003_v62  }
 0x16d   :  { %1978 = vmatmul.msk.f32.vlgmr.msra.gmra.mxu3 %vm87_vm1, %v2291_v56  ;;  %v2854_v35 = vpop.permute.xlu1 %1366 }
 0x16e   :  { %1404 = vmatpush.msra.mxu3 %v1361_v61 }
 0x16f   :  { %1986 = vmatmul.msk.f32.vlgmr.msra.gmra.mxu0 %vm87_vm1, %v2291_v56 }
 0x170   :  { %1587 = vmatpush.msra.mxu0 %v1563_v28 }
 0x171   :  { %1987 = vmatmul.msk.f32.vlgmr.msra.gmra.mxu1 %vm87_vm1, %v2291_v56 }
 0x172   :  { %1607 = vmatpush.msra.mxu1 %v1564_v45 }
 0x173   :  { %1983 = vmatmul.msk.f32.vlgmr.msrb.gmra.mxu2 %vm87_vm1, %v2291_v56 }
 0x174   :  { %1482 = vmatpush.msrb.mxu2 %v1458_v52  ;;  %1824 = vperm.xlu2 %2016, %v1821_v22  }
 0x175   :  { %1984 = vmatmul.msk.f32.vlgmr.msrb.gmra.mxu3 %vm87_vm1, %v2291_v56  ;;  %v2858_v26 = vpop.permute.xlu1 %1415 }
 0x176   :  { %1502 = vmatpush.msrb.mxu3 %v1459_v0 }
 0x177   :  { %1992 = vmatmul.msk.f32.vlgmr.msrb.gmra.mxu0 %vm87_vm1, %v2291_v56 }
 0x178   :  { %1685 = vmatpush.msrb.mxu0 %v1661_v33 }
 0x179   :  { %1993 = vmatmul.msk.f32.vlgmr.msrb.gmra.mxu1 %vm87_vm1, %v2291_v56 }
 0x17a   :  { %1705 = vmatpush.msrb.mxu1 %v1662_v36 }
 0x17b   :  { %1989 = vmatmul.msk.f32.vlgmr.msra.gmra.mxu2 %vm87_vm1, %v2291_v56 }
 0x17c   :  { %1636 = vmatpush.msra.mxu2 %v1612_v8 }
 0x17d   :  { %1990 = vmatmul.msk.f32.vlgmr.msra.gmra.mxu3 %vm87_vm1, %v2291_v56  ;;  %v2862_v32 = vpop.permute.xlu1 %1464 }
 0x17e   :  { %1656 = vmatpush.msra.mxu3 %v1613_v50 }
 0x17f   :  { %1998 = vmatmul.msk.f32.vlgmr.msra.gmra.mxu0 %vm87_vm1, %v2291_v56 }
 0x181   :  { %1999 = vmatmul.msk.f32.vlgmr.msra.gmra.mxu1 %vm87_vm1, %v2291_v56 }
 0x183   :  { %1995 = vmatmul.msk.f32.vlgmr.msrb.gmra.mxu2 %vm87_vm1, %v2291_v56 }
 0x184   :  { %1734 = vmatpush.msrb.mxu2 %v1710_v30 }
 0x185   :  { %1996 = vmatmul.msk.f32.vlgmr.msrb.gmra.mxu3 %vm87_vm1, %v2291_v56 }
 0x186   :  { %1754 = vmatpush.msrb.mxu3 %v1711_v29 }
 0x187   :  { %2004 = vmatmul.msk.f32.vlgmr.msrb.gmra.mxu0 %vm87_vm1, %v2291_v56 }
 0x189   :  { %2005 = vmatmul.msk.f32.vlgmr.msrb.gmra.mxu1 %vm87_vm1, %v2291_v56 }
 0x18b   :  { %2001 = vmatmul.msk.f32.vlgmr.msra.gmra.mxu2 %vm87_vm1, %v2291_v56 }
 0x18d   :  { %2002 = vmatmul.msk.f32.vlgmr.msra.gmra.mxu3 %vm87_vm1, %v2291_v56 }
 0x193   :  { %2007 = vmatmul.msk.f32.vlgmr.msrb.gmra.mxu2 %vm87_vm1, %v2291_v56 }
 0x195   :  { %2008 = vmatmul.msk.f32.vlgmr.msrb.gmra.mxu3 %vm87_vm1, %v2291_v56 }
 0x19b   :  { %v863_v24 = vpop.permute.xlu2 %862 }
 0x1a3   :  { %v2852_v13 = vpop.permute.xlu2 %1065 }
 0x1ad   :  { %v2856_v63 = vpop.permute.xlu2 %1163 }
 0x1b6   :  { %v961_v40 = vpop.permute.xlu2 %960 }
 0x1cc   :  { %v833_v49 = vpop.f32.mrf.mxu0 }
 0x1cd   :  { %v853_v10 = vpop.f32.mrf.mxu1  ;;  %v834_v9 = vadd.f32 %v833_v49, %v814_v25 }
 0x1ce   :  { %v854_v11 = vadd.f32 %v853_v10, %v814_v25 }
 0x1d4   :  { %v931_v58 = vpop.f32.mrf.mxu0 }
 0x1d5   :  { %v951_v53 = vpop.f32.mrf.mxu1  ;;  %v932_v23 = vadd.f32 %v931_v58, %v912_v38 }
 0x1d6   :  { %v952_v42 = vadd.f32 %v951_v53, %v912_v38 }
 0x1dc   :  { %v1085_v17 = vpop.f32.mrf.mxu0 }
 0x1dd   :  { %v2860_v18 = vpop.f32.mrf.mxu1  ;;  %v2871_v30 = vadd.f32 %v1085_v17, %v2852_v13 }
 0x1de   :  { %v882_v31 = vpop.f32.mrf.mxu2 }
 0x1df   :  { %v883_v56 = vadd.f32 %v882_v31, %v863_v24 }
 0x1e0   :  { %v902_v15 = vpop.f32.mrf.mxu3 }
 0x1e1   :  { %v903_v20 = vadd.f32 %v902_v15, %v863_v24  ;;  %v1003_v14 = vmax.f32 %v834_v9, %v883_v56  ;;  %v65_v24 = vpop.permute.xlu1 %64 }
 0x1e2   :  { %v2880_v58 = vadd.f32 %v2309_v3, %v65_v24  ;;  %v2885_v31 = vadd.f32 %v2311_v4, %v65_v24  ;;  %v2896_v3 = vadd.f32 %v2860_v18, %v2852_v13  ;;  %v2907_v13 = vadd.f32 %v2388_v47, %v65_v24 }
 0x1e3   :  { %v1004_v21 = vmax.f32 %v854_v11, %v903_v20  ;;  %v1005_v19 = vmax.f32 %v1003_v14, %v932_v23  ;;  %v2892_v14 = vadd.f32 %v2376_v43, %v65_v24  ;;  %v2904_v43 = vadd.f32 %v2378_v44, %v65_v24 }
 0x1e4   :  { %v1183_v34 = vpop.f32.mrf.mxu0 }
 0x1e5   :  { %v1006_v60 = vmax.f32 %v1004_v21, %v952_v42  ;;  %v1184_v15 = vadd.f32 %v1183_v34, %v2856_v63  ;;  %v2901_v34 = vadd.f32 %v2315_v6, %v65_v24  ;;  %v2913_v6 = vadd.f32 %v2390_v48, %v65_v24 }
 0x1e6   :  { %v980_v41 = vpop.f32.mrf.mxu2  ;;  %v2864_v37 = vpop.f32.mrf.mxu1 }
 0x1e7   :  { %v981_v46 = vadd.f32 %v980_v41, %v961_v40  ;;  %v1204_v44 = vadd.f32 %v2864_v37, %v2856_v63 }
 0x1e8   :  { %v1000_v57 = vpop.f32.mrf.mxu3 }
 0x1e9   :  { %v1007_v55 = vmax.f32 %v1005_v19, %v981_v46  ;;  %v1001_v1 = vadd.f32 %v1000_v57, %v961_v40 }
 0x1eb   :  { %v1009_v12 = vsub.f32 %v834_v9, %v1007_v55  ;;  %v1015_v2 = vsub.f32 %v883_v56, %v1007_v55  ;;  %v1021_v27 = vsub.f32 %v932_v23, %v1007_v55  ;;  %v1027_v54 = vsub.f32 %v981_v46, %v1007_v55 }
 0x1ec   :  { %v1008_v59 = vmax.f32 %v1006_v60, %v1001_v1  ;;  %v2873_v25 = vpop.f32.mrf.mxu0  ;;  %v2888_v56 = vadd.f32 %v2313_v5, %v65_v24 }
 0x1ed   :  { %v1011_v16 = vmul.f32 1.442695, %v1009_v12  ;;  %v1017_v61 = vmul.f32 1.442695, %v1015_v2  ;;  %v1023_v7 = vmul.f32 1.442695, %v1021_v27 }
 0x1ee   :  { %v1029_v28 = vmul.f32 1.442695, %v1027_v54  ;;  %v1010_v62 = vsub.f32 %v854_v11, %v1008_v59  ;;  %v1016_v45 = vsub.f32 %v903_v20, %v1008_v59  ;;  %v1022_v52 = vsub.f32 %v952_v42, %v1008_v59  ;;  %v1134_v0 = vpop.f32.mrf.mxu2  ;;  %v2875_v49 = vpop.f32.mrf.mxu1 }
 0x1ef   :  { %2049 = vpow2.f32 %v1011_v16  ;;  %v1028_v33 = vsub.f32 %v1001_v1, %v1008_v59  ;;  %v2868_v22 = vadd.f32 %v1134_v0, %v1115_v51  ;;  %v1213_v20 = vpop.permute.xlu0 %1212 }
 0x1f0   :  { %2051 = vpow2.f32 %v1017_v61  ;;  %v1013_v36 = vmul.f32 1.442695, %v1010_v62  ;;  %v1019_v8 = vmul.f32 1.442695, %v1016_v45  ;;  %v1154_v50 = vpop.f32.mrf.mxu3  ;;  %v1025_v29 = vmul.f32 1.442695, %v1022_v52 }
 0x1f1   :  { %2053 = vpow2.f32 %v1023_v7  ;;  %v1031_v38 = vmul.f32 1.442695, %v1028_v33  ;;  %v1255_v10 = vmax.f32 %v2871_v30, %v2868_v22  ;;  %v2882_v53 = vadd.f32 %v1154_v50, %v1115_v51 }
 0x1f2   :  { %2055 = vpow2.f32 %v1029_v28 }
 0x1f3   :  { %2057 = vpow2.f32 %v1013_v36  ;;  %v1257_v21 = vmax.f32 %v1255_v10, %v1184_v15  ;;  %v1256_v18 = vmax.f32 %v2896_v3, %v2882_v53 }
 0x1f4   :  { %2059 = vpow2.f32 %v1019_v8  ;;  %v1435_v16 = vpop.f32.mrf.mxu0 }
 0x1f5   :  { %v2050_v17 = vpop.eup %2049  ;;  %2061 = vpow2.f32 %v1025_v29  ;;  %v1258_v52 = vmax.f32 %v1256_v18, %v1204_v44 }
 0x1f6   :  { %v2052_v9 = vpop.eup %2051  ;;  %v1041_v51 = vmul.f32 %v2050_v17, %v2880_v58  ;;  %2063 = vpow2.f32 %v1031_v38  ;;  %v1232_v4 = vpop.f32.mrf.mxu2 }
 0x1f7   :  { %v2054_v11 = vpop.eup %2053  ;;  %v1033_v23 = vadd.f32 %v2052_v9, %v2050_v17  ;;  %v1043_v5 = vmul.f32 %v2052_v9, %v2888_v56  ;;  %v1233_v40 = vadd.f32 %v1232_v4, %v1213_v20  ;;  %v1455_v28 = vpop.f32.mrf.mxu1  ;;  %v2932_v17 = vadd.f32 %v2875_v49, %v2866_v39 }
 0x1f8   :  { %v2056_v41 = vpop.eup %2055  ;;  %v1252_v46 = vpop.f32.mrf.mxu3  ;;  %v1047_v55 = vmul.f32 %v2054_v11, %v2892_v14 }
 0x1f9   :  { %v2058_v19 = vpop.eup %2057  ;;  %v1035_v42 = vadd.f32 %v2054_v11, %v1033_v23  ;;  %v1045_v57 = vadd.f32 %v1043_v5, %v1041_v51  ;;  %v1259_v1 = vmax.f32 %v1257_v21, %v1233_v40  ;;  %v1051_v47 = vmul.f32 %v2056_v41, %v2907_v13 }
 0x1fa   :  { %v2060_v60 = vpop.eup %2059  ;;  %v1042_v12 = vmul.f32 %v2058_v19, %v2885_v31  ;;  %v1253_v61 = vadd.f32 %v1252_v46, %v1213_v20 }
 0x1fb   :  { %v2062_v2 = vpop.eup %2061  ;;  %v1037_v27 = vadd.f32 %v2056_v41, %v1035_v42  ;;  %v1049_v54 = vadd.f32 %v1047_v55, %v1045_v57  ;;  %v1044_v59 = vmul.f32 %v2060_v60, %v2901_v34  ;;  %v1261_v62 = vsub.f32 %v2871_v30, %v1259_v1 }
 0x1fc   :  { %v2064_v7 = vpop.eup %2063  ;;  %v1267_v48 = vsub.f32 %v2868_v22, %v1259_v1  ;;  %v1273_v45 = vsub.f32 %v1184_v15, %v1259_v1  ;;  %v1034_v37 = vadd.f32 %v2060_v60, %v2058_v19  ;;  %v1048_v33 = vmul.f32 %v2062_v2, %v2904_v43 }
 0x1fd   :  { %v2922_v63 = vadd.f32 %v1051_v47, %v1049_v54  ;;  %v1046_v0 = vadd.f32 %v1044_v59, %v1042_v12  ;;  %2065 = vrcp.f32 %v1037_v27  ;;  %v1052_v36 = vmul.f32 %v2064_v7, %v2913_v6 }
 0x1fe   :  { %v1263_v8 = vmul.f32 1.442695, %v1261_v62  ;;  %v1269_v50 = vmul.f32 1.442695, %v1267_v48  ;;  %v1386_v29 = vpop.f32.mrf.mxu2  ;;  %v1275_v38 = vmul.f32 1.442695, %v1273_v45  ;;  %v1279_v10 = vsub.f32 %v1233_v40, %v1259_v1 }
 0x1ff   :  { %v1050_v24 = vadd.f32 %v1048_v33, %v1046_v0  ;;  %v1260_v30 = vmax.f32 %v1258_v52, %v1253_v61  ;;  %v2928_v22 = vadd.f32 %v2873_v25, %v2866_v39  ;;  %v2935_v15 = vadd.f32 %v1386_v29, %v2854_v35  ;;  %v1609_v57 = vpop.f32.mrf.mxu1 }
 0x200   :  { %2067 = vpow2.f32 %v1263_v8  ;;  %v1406_v9 = vpop.f32.mrf.mxu3  ;;  %v1036_v20 = vadd.f32 %v2062_v2, %v1034_v37  ;;  %v1281_v4 = vmul.f32 1.442695, %v1279_v10  ;;  %v2954_v2 = vadd.f32 %v1455_v28, %v2858_v26 }
 0x201   :  { %v2937_v51 = vadd.f32 %v1052_v36, %v1050_v24  ;;  %v1262_v11 = vsub.f32 %v2896_v3, %v1260_v30  ;;  %2069 = vpow2.f32 %v1269_v50  ;;  %v1268_v23 = vsub.f32 %v2882_v53, %v1260_v30  ;;  %v1589_v53 = vpop.f32.mrf.mxu0  ;;  %v1619_v50 = vpop.permute.xlu0 %1618 }
 0x202   :  { %v1274_v25 = vsub.f32 %v1204_v44, %v1260_v30  ;;  %v1280_v5 = vsub.f32 %v1253_v61, %v1260_v30  ;;  %2071 = vpow2.f32 %v1275_v38  ;;  %v1507_v39 = vmax.f32 %v2928_v22, %v2935_v15 }
 0x203   :  { %v1265_v40 = vmul.f32 1.442695, %v1262_v11  ;;  %v2944_v49 = vadd.f32 %v1406_v9, %v2854_v35  ;;  %v2946_v21 = vpop.eup %2065  ;;  %2073 = vpow2.f32 %v1281_v4  ;;  %v1271_v41 = vmul.f32 1.442695, %v1268_v23  ;;  %v1570_v35 = vpop.permute.xlu2 %1569 }
 0x204   :  { %v1277_v18 = vmul.f32 1.442695, %v1274_v25  ;;  %v1283_v46 = vmul.f32 1.442695, %v1280_v5  ;;  %v1436_v3 = vadd.f32 %v1435_v16, %v2858_v26  ;;  %v1038_v42 = vadd.f32 %v2064_v7, %v1036_v20 }
 0x205   :  { %2075 = vpow2.f32 %v1265_v40  ;;  %v1508_v55 = vmax.f32 %v2932_v17, %v2944_v49  ;;  %v2956_v27 = vadd.f32 %v1589_v53, %v1570_v35  ;;  %v2959_v7 = vadd.f32 %v1609_v57, %v1570_v35 }
 0x206   :  { %v2068_v19 = vpop.eup %2067  ;;  %2077 = vpow2.f32 %v1271_v41  ;;  %v1484_v1 = vpop.f32.mrf.mxu2  ;;  %v1509_v47 = vmax.f32 %v1507_v39, %v1436_v3 }
 0x207   :  { %v1293_v60 = vmul.f32 %v2068_v19, %v2880_v58  ;;  %2079 = vpow2.f32 %v1277_v18  ;;  %v1485_v44 = vadd.f32 %v1484_v1, %v2862_v32  ;;  %v2070_v12 = vpop.eup %2069  ;;  %v1510_v26 = vmax.f32 %v1508_v55, %v2954_v2  ;;  %v1707_v35 = vpop.f32.mrf.mxu1 }
 0x208   :  { %2081 = vpow2.f32 %v1283_v46  ;;  %v1504_v54 = vpop.f32.mrf.mxu3  ;;  %v2072_v59 = vpop.eup %2071  ;;  %v1285_v16 = vadd.f32 %v2070_v12, %v2068_v19  ;;  %v1295_v61 = vmul.f32 %v2070_v12, %v2888_v56 }
 0x209   :  { %v1511_v62 = vmax.f32 %v1509_v47, %v1485_v44  ;;  %v2074_v48 = vpop.eup %2073  ;;  %2083 = vrcp.f32 %v1038_v42  ;;  %v1299_v45 = vmul.f32 %v2072_v59, %v2892_v14  ;;  %v1505_v52 = vadd.f32 %v1504_v54, %v2862_v32  ;;  %v1687_v55 = vpop.f32.mrf.mxu0 }
 0x20a   :  { %v1287_v37 = vadd.f32 %v2072_v59, %v1285_v16  ;;  %v1297_v0 = vadd.f32 %v1295_v61, %v1293_v60  ;;  %v1303_v33 = vmul.f32 %v2074_v48, %v2907_v13 }
 0x20b   :  { %v2076_v28 = vpop.eup %2075  ;;  %v1513_v36 = vsub.f32 %v2928_v22, %v1511_v62  ;;  %v1519_v24 = vsub.f32 %v2935_v15, %v1511_v62  ;;  %v1525_v38 = vsub.f32 %v1436_v3, %v1511_v62  ;;  %v1531_v10 = vsub.f32 %v1485_v44, %v1511_v62  ;;  %v1668_v12 = vpop.permute.xlu2 %1667 }
 0x20c   :  { %v2078_v8 = vpop.eup %2077  ;;  %v1294_v29 = vmul.f32 %v2076_v28, %v2885_v31  ;;  %v1289_v9 = vadd.f32 %v2074_v48, %v1287_v37  ;;  %v1301_v32 = vadd.f32 %v1299_v45, %v1297_v0  ;;  %v1512_v53 = vmax.f32 %v1510_v26, %v1505_v52  ;;  %v1717_v0 = vpop.permute.xlu0 %1716 }
 0x20d   :  { %v2080_v30 = vpop.eup %2079  ;;  %v1286_v20 = vadd.f32 %v2078_v8, %v2076_v28  ;;  %v1296_v4 = vmul.f32 %v2078_v8, %v2901_v34  ;;  %v1515_v25 = vmul.f32 1.442695, %v1513_v36  ;;  %v1521_v5 = vmul.f32 1.442695, %v1519_v24 }
 0x20e   :  { %v2082_v11 = vpop.eup %2081  ;;  %v1300_v23 = vmul.f32 %v2080_v30, %v2904_v43  ;;  %v1527_v22 = vmul.f32 1.442695, %v1525_v38  ;;  %v1638_v40 = vpop.f32.mrf.mxu2  ;;  %2085 = vrcp.f32 %v1289_v9  ;;  %v1305_v39 = vadd.f32 %v1303_v33, %v1301_v32 }
 0x20f   :  { %v1288_v41 = vadd.f32 %v2080_v30, %v1286_v20  ;;  %v1298_v18 = vadd.f32 %v1296_v4, %v1294_v29  ;;  %v2084_v15 = vpop.eup %2083  ;;  %v1304_v46 = vmul.f32 %v2082_v11, %v2913_v6  ;;  %2087 = vpow2.f32 %v1515_v25 }
 0x210   :  { %v1533_v3 = vmul.f32 1.442695, %v1531_v10  ;;  %v1658_v19 = vpop.f32.mrf.mxu3  ;;  %2089 = vpow2.f32 %v1521_v5  ;;  %v1639_v1 = vadd.f32 %v1638_v40, %v1619_v50  ;;  %v1514_v60 = vsub.f32 %v2932_v17, %v1512_v53 }
 0x211   :  { %v1290_v42 = vadd.f32 %v2082_v11, %v1288_v41  ;;  %v1302_v57 = vadd.f32 %v1300_v23, %v1298_v18  ;;  %2091 = vpow2.f32 %v1527_v22  ;;  %v1520_v44 = vsub.f32 %v2944_v49, %v1512_v53 }
 0x212   :  { %v1526_v47 = vsub.f32 %v2954_v2, %v1512_v53  ;;  %v1532_v59 = vsub.f32 %v1505_v52, %v1512_v53  ;;  %v1759_v16 = vmax.f32 %v2956_v27, %v1639_v1  ;;  %v1688_v61 = vadd.f32 %v1687_v55, %v1668_v12 }
 0x213   :  { %2093 = vrcp.f32 %v1290_v42  ;;  %v1306_v54 = vadd.f32 %v1304_v46, %v1302_v57  ;;  %v1517_v62 = vmul.f32 1.442695, %v1514_v60  ;;  %v1523_v48 = vmul.f32 1.442695, %v1520_v44 }
 0x214   :  { %v1055_v45 = vmul.f32 %v2946_v21, %v2922_v63  ;;  %v2086_v26 = vpop.eup %2085  ;;  %v1708_v28 = vadd.f32 %v1707_v35, %v1668_v12  ;;  %2095 = vpow2.f32 %v1533_v3  ;;  %v1529_v17 = vmul.f32 1.442695, %v1526_v47 }
 0x215   :  { %v1659_v37 = vadd.f32 %v1658_v19, %v1619_v50  ;;  %v2088_v49 = vpop.eup %2087  ;;  %2097 = vpow2.f32 %v1517_v62  ;;  %v1535_v2 = vmul.f32 1.442695, %v1532_v59  ;;  %v1761_v36 = vmax.f32 %v1759_v16, %v1688_v61 }
 0x216   :  { %v1736_v33 = vpop.f32.mrf.mxu2  ;;  %v1307_v52 = vmul.f32 %v2086_v26, %v1305_v39  ;;  %v2090_v8 = vpop.eup %2089  ;;  %2099 = vpow2.f32 %v1523_v48  ;;  %v1545_v38 = vmul.f32 %v2088_v49, %v2880_v58  ;;  %v1056_v9 = vmul.f32 %v2084_v15, %v2937_v51 }
 0x217   :  { %v1760_v29 = vmax.f32 %v2959_v7, %v1659_v37  ;;  %v1737_v24 = vadd.f32 %v1736_v33, %v1717_v0  ;;  %v2092_v63 = vpop.eup %2091  ;;  %v1537_v21 = vadd.f32 %v2090_v8, %v2088_v49  ;;  %v1547_v50 = vmul.f32 %v2090_v8, %v2888_v56 }
 0x218   :  { %v1756_v10 = vpop.f32.mrf.mxu3  ;;  %v2979_v30 = vadd.f32 %v1307_v52, %v1055_v45  ;;  %2101 = vpow2.f32 %v1529_v17  ;;  %v1551_v5 = vmul.f32 %v2092_v63, %v2892_v14 }
 0x219   :  { %v2094_v32 = vpop.eup %2093  ;;  %v1763_v20 = vmax.f32 %v1761_v36, %v1737_v24  ;;  %v1757_v4 = vadd.f32 %v1756_v10, %v1717_v0  ;;  %v1762_v11 = vmax.f32 %v1760_v29, %v1708_v28  ;;  %v1539_v23 = vadd.f32 %v2092_v63, %v1537_v21 }
 0x21a   :  { %v1549_v25 = vadd.f32 %v1547_v50, %v1545_v38  ;;  %v1308_v22 = vmul.f32 %v2094_v32, %v1306_v54  ;;  %v2096_v40 = vpop.eup %2095  ;;  %2103 = vpow2.f32 %v1535_v2 }
 0x21b   :  { %v1765_v39 = vsub.f32 %v2956_v27, %v1763_v20  ;;  %v1771_v41 = vsub.f32 %v1639_v1, %v1763_v20  ;;  %v1777_v18 = vsub.f32 %v1688_v61, %v1763_v20  ;;  %v2098_v46 = vpop.eup %2097  ;;  %v1541_v3 = vadd.f32 %v2096_v40, %v1539_v23 }
 0x21c   :  { %v1783_v53 = vsub.f32 %v1737_v24, %v1763_v20  ;;  %v1764_v51 = vmax.f32 %v1762_v11, %v1757_v4  ;;  %v1553_v15 = vadd.f32 %v1551_v5, %v1549_v25  ;;  %v2100_v19 = vpop.eup %2099  ;;  %v1310_v35 = vadd.f32 %v1308_v22, %v1056_v9 }
 0x21d   :  { %v1767_v42 = vmul.f32 1.442695, %v1765_v39  ;;  %v1773_v57 = vmul.f32 1.442695, %v1771_v41  ;;  %v1779_v55 = vmul.f32 1.442695, %v1777_v18  ;;  %2105 = vrcp.f32 %v1541_v3 }
 0x21e   :  { %v1538_v60 = vadd.f32 %v2100_v19, %v2098_v46  ;;  %v1785_v44 = vmul.f32 1.442695, %v1783_v53  ;;  %v1766_v47 = vsub.f32 %v2959_v7, %v1764_v51  ;;  %v2102_v12 = vpop.eup %2101  ;;  %v1772_v27 = vsub.f32 %v1659_v37, %v1764_v51 }
 0x21f   :  { %2107 = vpow2.f32 %v1767_v42  ;;  %v1778_v1 = vsub.f32 %v1708_v28, %v1764_v51  ;;  %v1784_v54 = vsub.f32 %v1757_v4, %v1764_v51  ;;  %v1555_v59 = vmul.f32 %v2096_v40, %v2907_v13 }
 0x220   :  { %v1540_v16 = vadd.f32 %v2102_v12, %v1538_v60  ;;  %2109 = vpow2.f32 %v1773_v57  ;;  %v1769_v61 = vmul.f32 1.442695, %v1766_v47  ;;  %v2104_v62 = vpop.eup %2103  ;;  %v1775_v48 = vmul.f32 1.442695, %v1772_v27  ;;  %v1817_v47 = vld [vmem:[%s3037_s6] sm:$0xff] }
 0x221   :  { %2111 = vpow2.f32 %v1779_v55  ;;  %v1781_v45 = vmul.f32 1.442695, %v1778_v1  ;;  %v1557_v17 = vadd.f32 %v1555_v59, %v1553_v15  ;;  %v1546_v49 = vmul.f32 %v2098_v46, %v2885_v31  ;;  %v1825_v59 = vpop.permute.xlu2 %1824 }
 0x222   :  { %v1542_v26 = vadd.f32 %v2104_v62, %v1540_v16  ;;  %2113 = vpow2.f32 %v1785_v44  ;;  %v1787_v7 = vmul.f32 1.442695, %v1784_v54  ;;  %v1548_v37 = vmul.f32 %v2100_v19, %v2901_v34 }
 0x223   :  { %2115 = vpow2.f32 %v1769_v61  ;;  %v2106_v28 = vpop.eup %2105  ;;  %v1552_v8 = vmul.f32 %v2102_v12, %v2904_v43  ;;  %v1556_v10 = vmul.f32 %v2104_v62, %v2913_v6  ;;  %v1818_v27 = vpack.c.bf16 %v1817_v47, %v1817_v47  ;;  %v1862_v62 = vld [vmem:[%s3038_s8] sm:$0xff] }
 0x224   :  { %2117 = vrcp.f32 %v1542_v26  ;;  %v1559_v2 = vmul.f32 %v2106_v28, %v1557_v17  ;;  %v1550_v33 = vadd.f32 %v1548_v37, %v1546_v49  ;;  %v1866_v37 = vld [vmem:[%s3039_s9] sm:$0xff]  ;;  %v1867_v28 = vld [vmem:[%s3039_s9 + $0x8] sm:$0xff] }
 0x225   :  { %v2108_v0 = vpop.eup %2107  ;;  %2119 = vpow2.f32 %v1775_v48  ;;  %v1863_v48 = vld [vmem:[%s3038_s8 + $0x8] sm:$0xff] }
 0x226   :  { %v2110_v36 = vpop.eup %2109  ;;  %2121 = vpow2.f32 %v1781_v45  ;;  %v1797_v52 = vmul.f32 %v2108_v0, %v2880_v58  ;;  %v1561_v38 = vadd.f32 %v1559_v2, %v2979_v30  ;;  %v1554_v50 = vadd.f32 %v1552_v8, %v1550_v33 }
 0x227   :  { %v2112_v29 = vpop.eup %2111  ;;  %v1789_v24 = vadd.f32 %v2110_v36, %v2108_v0  ;;  %2123 = vpow2.f32 %v1787_v7  ;;  %v1799_v63 = vmul.f32 %v2110_v36, %v2888_v56  ;;  %v1864_v49 = vpack.c.bf16 %v1863_v48, %v1862_v62 }
 0x228   :  { %v2114_v21 = vpop.eup %2113  ;;  %v1803_v4 = vmul.f32 %v2112_v29, %v2892_v14  ;;  %v1558_v58 = vadd.f32 %v1556_v10, %v1554_v50  ;;  %v1868_v36 = vpack.c.bf16 %v1867_v28, %v1866_v37 }
 0x229   :  { %v2116_v9 = vpop.eup %2115  ;;  %v1791_v32 = vadd.f32 %v2112_v29, %v1789_v24  ;;  %v1801_v20 = vadd.f32 %v1799_v63, %v1797_v52  ;;  %v1807_v22 = vmul.f32 %v2114_v21, %v2907_v13 }
 0x22a   :  { %v2118_v11 = vpop.eup %2117  ;;  %v1798_v23 = vmul.f32 %v2116_v9, %v2885_v31 }
 0x22b   :  { %v2120_v25 = vpop.eup %2119  ;;  %v1793_v5 = vadd.f32 %v2114_v21, %v1791_v32  ;;  %v1805_v30 = vadd.f32 %v1803_v4, %v1801_v20  ;;  %v1560_v39 = vmul.f32 %v2118_v11, %v1558_v58 }
 0x22c   :  { %v2122_v40 = vpop.eup %2121  ;;  %v1790_v56 = vadd.f32 %v2120_v25, %v2116_v9  ;;  %v1800_v41 = vmul.f32 %v2120_v25, %v2901_v34  ;;  %v1920_v9 = vpop.permute.xlu1 %1919 }
 0x22d   :  { %v2124_v18 = vpop.eup %2123  ;;  %2125 = vrcp.f32 %v1793_v5  ;;  %v1809_v46 = vadd.f32 %v1807_v22, %v1805_v30  ;;  %v1562_v53 = vadd.f32 %v1560_v39, %v1310_v35  ;;  %v1804_v51 = vmul.f32 %v2122_v40, %v2904_v43 }
 0x22e   :  { %v1792_v3 = vadd.f32 %v2122_v40, %v1790_v56  ;;  %v1802_v14 = vadd.f32 %v1800_v41, %v1798_v23  ;;  %v1808_v31 = vmul.f32 %v2124_v18, %v2913_v6 }
 0x230   :  { %v1794_v15 = vadd.f32 %v2124_v18, %v1792_v3  ;;  %v1806_v19 = vadd.f32 %v1804_v51, %v1802_v14 }
 0x232   :  { %2127 = vrcp.f32 %v1794_v15  ;;  %v1810_v13 = vadd.f32 %v1808_v31, %v1806_v19 }
 0x233   :  { %v2126_v42 = vpop.eup %2125 }
 0x234   :  { %v1811_v57 = vmul.f32 %v2126_v42, %v1809_v46 }
 0x236   :  { %v1813_v55 = vadd.f32 %v1811_v57, %v1561_v38  ;;  %v1915_v38 = vpop.permute.xlu0 %1914 }
 0x238   :  { %v2128_v60 = vpop.eup %2127  ;;  %v1815_v44 = vmul.f32 0.25, %v1813_v55 }
 0x239   :  { %v1812_v34 = vmul.f32 %v2128_v60, %v1810_v13 }
 0x23a   :  { %v1819_v35 = vpack.c.bf16 %v1815_v44, %v1815_v44 }
 0x23b   :  { %v1814_v12 = vadd.f32 %v1812_v34, %v1562_v53 }
 0x23c   :  { %v1831_v43 = vsel %vm94_vm0, %v1819_v35, 0 }
 0x23d   :  { %1843 = vmatpush.bf16.msra.mxu0 %v1831_v43  ;;  %v1816_v6 = vmul.f32 0.25, %v1814_v12 }
 0x23f   :  { %v1820_v1 = vpack.c.bf16 %v1816_v6, %v1816_v6 }
 0x240   :  { %2009 = vmatmul.msk.bf16.vlgmr.msra.gmra.mxu0 %vm87_vm1, %v1818_v27 }
 0x241   :  { %v1834_v54 = vsel %vm94_vm0, %v1820_v1, 0 }
 0x242   :  { %1856 = vmatpush.bf16.msra.mxu1 %v1834_v54 }
 0x245   :  { %2010 = vmatmul.msk.bf16.vlgmr.msra.gmra.mxu1 %vm87_vm1, %v1818_v27 }
 0x2bd   :  { %v1845_v16 = vpop.f32.mrf.mxu0 }
 0x2be   :  { %v1846_v61 = vadd.f32 %v1845_v16, %v1825_v59 }
 0x2c0   :  { %v1865_v45 = vpack.c.bf16 %v1846_v61, %v1846_v61 }
 0x2c2   :  { %v1894_v26 = vsel %vm94_vm0, %v1865_v45, 0  ;;  %v1858_v17 = vpop.f32.mrf.mxu1 }
 0x2c3   :  { %v1859_v7 = vadd.f32 %v1858_v17, %v1825_v59  ;;  %1903 = vmatpush.bf16.msra.mxu3 %v1894_v26 }
 0x2c5   :  { %v1869_v0 = vpack.c.bf16 %v1859_v7, %v1859_v7  ;;  %v1847_v2 = vpop.f32.mrf.mxu0 }
 0x2c6   :  { %2012 = vmatmul.msk.bf16.vlgmr.msra.gmra.mxu3 %vm87_vm1, %v1864_v49 }
 0x2c7   :  { %v1874_v33 = vsel %vm94_vm0, %v1869_v0, 0 }
 0x2c8   :  { %1883 = vmatpush.bf16.msra.mxu2 %v1874_v33 }
 0x2ca   :  { %v1860_v52 = vpop.f32.mrf.mxu1 }
 0x2cb   :  { %2011 = vmatmul.msk.bf16.vlgmr.msra.gmra.mxu2 %vm87_vm1, %v1868_v36 }
 0x349   :  { %v1905_v8 = vpop.f32.mrf.mxu3 }
 0x34e   :  { %v1885_v29 = vpop.f32.mrf.mxu2 }
 0x34f   :  { %v1906_v24 = vadd.f32 %v1905_v8, %v1885_v29 }
 0x351   :  { %v1922_v63 = vadd.f32 %v1915_v38, %v1906_v24  ;;  %v1907_v21 = vpop.f32.mrf.mxu3 }
 0x353   :  { %1924 = vst [vmem:[%s3040_s11] sm:$0xff] %v1922_v63 }
 0x356   :  { %v1887_v10 = vpop.f32.mrf.mxu2 }
 0x357   :  { %v1908_v50 = vadd.f32 %v1907_v21, %v1887_v10 }
 0x359   :  { %v1923_v32 = vadd.f32 %v1920_v9, %v1908_v50 }
 0x35b   :  { %1925 = vst [vmem:[%s3040_s11 + $0x8] sm:$0xff] %v1923_v32 }

</bundles_post_ra>
